<compile_context>
chip_gen: v7x
topology: tpu7x:2x2x1
jax: 0.10.0
libtpu: 0.0.40
codegen_flags: <defaults>
</compile_context>

<pallas_src>
import functools

import jax
import jax.numpy as jnp
from jax.experimental import pallas as pl
from jax.experimental.pallas import tpu as pltpu


def _round_up(x, m):
    return (x + m - 1) // m * m


def _vmem_limit_bytes():
    """Per-generation scoped VMEM limit (leave headroom for compiler scratch)."""
    phys = 64 << 20                            # conservative default (v7x per-TC)
    try:
        info = pltpu.get_tpu_info()
        phys = int(getattr(info, "vmem_capacity_bytes", phys) or phys)
    except Exception:
        pass
    # 128-MiB parts (v5e/v6e): allow ~100 MiB.  64-MiB parts (v7x): 48 MiB cap
    # keeps ~16 MiB headroom for internal scratch + resident weights.
    return (100 << 20) if phys >= (96 << 20) else (48 << 20)


def _conv_im2col_kernel(x_ref, w_ref, b_ref, o_ref, patch_ref, *,
                        kh_sz, kw_sz, stride, ci, wo_p, ho_chunk, n_chunks):
    """One grid step = one image: in-kernel im2col + one MXU matmul per HO chunk.

    x_ref:     (1, H_in, W_in, CI)    padded input image (compute dtype)
    w_ref:     (K, CO_P)              grid-resident weights, K = KH*KW*CI
    b_ref:     (1, CO_P)              grid-resident f32 bias
    o_ref:     (1, HO_P*WO_P, CO_P)   output rows for this image
    patch_ref: (ho_chunk*WO_P, K)     VMEM scratch for the im2col patch tile
    """
    w = w_ref[...]                     # loaded once; stays in VMEM/vregs
    bias = b_ref[...]                  # (1, CO_P) f32
    rows_in = (ho_chunk - 1) * stride + kh_sz
    m_chunk = ho_chunk * wo_p

    for c in range(n_chunks):          # static (trace-time) chunking over HO
        r0 = c * ho_chunk * stride
        # Row slab covering this chunk's receptive field (static slice).
        slab = x_ref[0, r0:r0 + rows_in, :, :]          # (rows_in, W_in, CI)

        # Build the KH*KW taps as shifted slices and assemble the patch matrix
        # (tap-major along lanes, matching the weight row order).
        for kh in range(kh_sz):
            for kw in range(kw_sz):
                tap = jax.lax.slice(
                    slab,
                    (kh, kw, 0),
                    (kh + (ho_chunk - 1) * stride + 1,
                     kw + (wo_p - 1) * stride + 1,
                     ci),
                    (stride, stride, 1))                # (ho_chunk, WO_P, CI)
                t = kh * kw_sz + kw
                patch_ref[:, t * ci:(t + 1) * ci] = tap.reshape(m_chunk, ci)

        # One im2col matmul with full contraction depth K = KH*KW*CI; f32
        # accumulation, bias folded in directly (no separate epilogue pass).
        acc = jnp.dot(patch_ref[...], w, preferred_element_type=jnp.float32)
        o_ref[0, c * m_chunk:(c + 1) * m_chunk, :] = (acc + bias).astype(o_ref.dtype)


def conv2d_pallas(x_nchw, w_oihw, bias, *, stride, padding,
                  compute_dtype=jnp.bfloat16, out_format="NCHW"):
    """Equivalent of torch.nn.Conv2d(...)(x) with groups=1, dilation=1.

    compute_dtype: MXU operand dtype (bf16 default: native MXU rate and half the
      DMA bytes on v5e/v6e/v7x); accumulation is always f32.  Pass jnp.float32
      (or None = input dtype) for a bit-accurate f32 path.
    out_format: "NCHW" (PyTorch parity) or "NHWC" (drops the output transpose).
    """
    N, CI, H, W = x_nchw.shape
    CO, CI_w, KH, KW = w_oihw.shape
    assert CI_w == CI, "groups != 1 not supported"
    if compute_dtype is None:
        compute_dtype = x_nchw.dtype
    out_dtype = x_nchw.dtype

    HO = (H + 2 * padding - KH) // stride + 1
    WO = (W + 2 * padding - KW) // stride + 1
    K = KH * KW * CI

    # ---- alignment / tiling ------------------------------------------------
    itemsize = jnp.dtype(compute_dtype).itemsize
    pack = max(8, 32 // itemsize)          # sublane packing: 8 f32, 16 bf16
    CO_P = _round_up(CO, 128)              # lane-dense output stores
    WO_P = _round_up(WO, pack)             # layout-free (HO,WO,K)->(HO*WO,K)

    vmem_limit = _vmem_limit_bytes()
    # Chunk HO so the per-chunk patch tile + f32 accumulator stay modest.
    patch_budget = (8 << 20) if vmem_limit > (64 << 20) else (4 << 20)
    bytes_per_ho_row = WO_P * (K * itemsize + CO_P * 4)
    ho_chunk = max(1, min(HO, patch_budget // max(1, bytes_per_ho_row)))
    HO_P = _round_up(HO, ho_chunk)
    n_chunks = HO_P // ho_chunk

    # ---- wrapper-side layout glue: just pad + transpose (NO im2col slab) ----
    x_nhwc = jnp.transpose(x_nchw, (0, 2, 3, 1))
    H_in = max(H + 2 * padding, (HO_P - 1) * stride + KH)
    W_in = max(W + 2 * padding, (WO_P - 1) * stride + KW)
    x_pad = jnp.pad(
        x_nhwc,
        ((0, 0),
         (padding, H_in - H - padding),
         (padding, W_in - W - padding),
         (0, 0)),
    ).astype(compute_dtype)

    # (CO, CI, KH, KW) -> (KH, KW, CI, CO) -> (K, CO_P): tap-major rows match
    # the in-kernel patch assembly order.
    w2d = jnp.transpose(w_oihw, (2, 3, 1, 0)).reshape(K, CO)
    w2d = jnp.pad(w2d, ((0, 0), (0, CO_P - CO))).astype(compute_dtype)
    b1d = bias if bias is not None else jnp.zeros((CO,), jnp.float32)
    b2d = jnp.pad(b1d.astype(jnp.float32), (0, CO_P - CO)).reshape(1, CO_P)

    M_img = HO_P * WO_P
    m_chunk = ho_chunk * WO_P

    kernel = functools.partial(
        _conv_im2col_kernel, kh_sz=KH, kw_sz=KW, stride=stride, ci=CI,
        wo_p=WO_P, ho_chunk=ho_chunk, n_chunks=n_chunks)

    out2d = pl.pallas_call(
        kernel,
        out_shape=jax.ShapeDtypeStruct((N, M_img, CO_P), out_dtype),
        grid_spec=pltpu.PrefetchScalarGridSpec(
            num_scalar_prefetch=0,
            grid=(N,),                      # one image per step; N>=2 keeps both
                                            # v7x TensorCores busy.
            in_specs=[
                # Padded image: DMA'd once per grid step (no HBM patch slab).
                pl.BlockSpec((1, H_in, W_in, CI), lambda n: (n, 0, 0, 0)),
                # Weights / bias: constant block index -> copied to VMEM once
                # and kept resident for the whole kernel.
                pl.BlockSpec((K, CO_P), lambda n: (0, 0)),
                pl.BlockSpec((1, CO_P), lambda n: (0, 0)),
            ],
            out_specs=pl.BlockSpec((1, M_img, CO_P), lambda n: (n, 0, 0)),
            scratch_shapes=[pltpu.VMEM((m_chunk, K), compute_dtype)],
        ),
        compiler_params=pltpu.CompilerParams(
            dimension_semantics=("parallel",),
            vmem_limit_bytes=int(vmem_limit),
        ),
    )(x_pad, w2d, b2d)

    # Un-pad; return in PyTorch NCHW convention (or NHWC to skip the transpose).
    out = out2d.reshape(N, HO_P, WO_P, CO_P)[:, :HO, :WO, :CO]
    if out_format == "NHWC":
        return out
    return jnp.transpose(out, (0, 3, 1, 2))


if __name__ == "__main__":
    # Module config: Conv(in_channels=4, out_channels=8, kernel_size=3,
    #                     stride=1, bias=True, padding=1); input (2, 4, 16, 16).
    N, CI, H, W = 2, 4, 16, 16
    CO, KH, KW = 8, 3, 3
    stride, padding = 1, 1

    key = jax.random.PRNGKey(0)
    kx, kkw, kkb = jax.random.split(key, 3)

    x = jax.random.normal(kx, (N, CI, H, W), dtype=jnp.float32)
    # Deterministic PyTorch-style init: U(-k, k), k = 1/sqrt(CI*KH*KW)
    bound = 1.0 / jnp.sqrt(jnp.float32(CI * KH * KW))
    w = jax.random.uniform(kkw, (CO, CI, KH, KW), jnp.float32, -bound, bound)
    b = jax.random.uniform(kkb, (CO,), jnp.float32, -bound, bound)

    # Reference (same semantics as nn.Conv2d).
    ref = jax.lax.conv_general_dilated(
        x, w, window_strides=(stride, stride),
        padding=((padding, padding), (padding, padding)),
        dimension_numbers=("NCHW", "OIHW", "NCHW"),
    ) + b.reshape(1, CO, 1, 1)

    # Default path: bf16 MXU operands, f32 accumulation (loose tolerance is
    # operand-rounding only; accumulation stays f32).
    conv_bf16 = jax.jit(functools.partial(conv2d_pallas, stride=stride,
                                          padding=padding))
    out_bf16 = jax.block_until_ready(conv_bf16(x, w, b))
    assert out_bf16.shape == (N, CO, H, W), out_bf16.shape
    assert jnp.allclose(out_bf16, ref, atol=5e-2, rtol=5e-2), (
        "bf16 path max abs err: %f" % float(jnp.max(jnp.abs(out_bf16 - ref))))

    # f32 operand path: bit-accurate check.
    conv_f32 = jax.jit(functools.partial(conv2d_pallas, stride=stride,
                                         padding=padding,
                                         compute_dtype=jnp.float32))
    out_f32 = jax.block_until_ready(conv_f32(x, w, b))
    assert jnp.allclose(out_f32, ref, atol=1e-5, rtol=1e-5), (
        "f32 path max abs err: %f" % float(jnp.max(jnp.abs(out_f32 - ref))))

    print("KERNEL_OK")
</pallas_src>

<mosaic_0001>
module attributes {stable_mosaic.version = 11 : i64} {
  func.func @_conv_im2col_kernel(%arg0: i32, %arg1: memref<1x18x18x4xbf16, #tpu.memory_space<vmem>>, %arg2: memref<36x128xbf16, #tpu.memory_space<vmem>>, %arg3: memref<1x128xf32, #tpu.memory_space<vmem>>, %arg4: memref<1x256x128xf32, #tpu.memory_space<vmem>>, %arg5: memref<256x36xbf16, #tpu.memory_space<vmem>>) attributes {dimension_semantics = [#tpu.dimension_semantics<parallel>], iteration_bounds = array<i64: 2>, scalar_prefetch = 0 : i64, scratch_operands = 1 : i64, tpu.core_type = #tpu.core_type<tc>, window_params = [{transform_indices = @transform_0, window_bounds = array<i64: 1, 18, 18, 4>}, {pipeline_mode = #tpu.pipeline_mode<synchronous>, transform_indices = @transform_1, window_bounds = array<i64: 36, 128>}, {pipeline_mode = #tpu.pipeline_mode<synchronous>, transform_indices = @transform_2, window_bounds = array<i64: 1, 128>}, {transform_indices = @transform_3, window_bounds = array<i64: 1, 256, 128>}]} {
    %c0 = arith.constant 0 : index
    %c0_0 = arith.constant 0 : index
    %0 = vector.load %arg2[%c0, %c0_0] : memref<36x128xbf16, #tpu.memory_space<vmem>>, vector<36x128xbf16>
    %c0_1 = arith.constant 0 : index
    %c0_2 = arith.constant 0 : index
    %1 = vector.load %arg3[%c0_1, %c0_2] : memref<1x128xf32, #tpu.memory_space<vmem>>, vector<1x128xf32>
    %c0_3 = arith.constant 0 : index
    %c0_4 = arith.constant 0 : index
    %c0_5 = arith.constant 0 : index
    %c0_6 = arith.constant 0 : index
    %2 = vector.load %arg1[%c0_3, %c0_4, %c0_5, %c0_6] : memref<1x18x18x4xbf16, #tpu.memory_space<vmem>>, vector<1x18x18x4xbf16>
    %3 = vector.shape_cast %2 : vector<1x18x18x4xbf16> to vector<18x18x4xbf16>
    %4 = vector.extract_strided_slice %3 {offsets = [0, 0, 0], sizes = [16, 16, 4], strides = [1, 1, 1]} : vector<18x18x4xbf16> to vector<16x16x4xbf16>
    %5 = vector.shape_cast %4 : vector<16x16x4xbf16> to vector<256x4xbf16>
    %c0_7 = arith.constant 0 : index
    %c0_8 = arith.constant 0 : index
    %6 = vector.load %arg5[%c0_7, %c0_8] : memref<256x36xbf16, #tpu.memory_space<vmem>>, vector<256x4xbf16>
    tpu.vector_store %arg5[%c0_7, %c0_8], %5 {strides = array<i32>} : memref<256x36xbf16, #tpu.memory_space<vmem>>, vector<256x4xbf16>,
    %7 = vector.extract_strided_slice %3 {offsets = [0, 1, 0], sizes = [16, 16, 4], strides = [1, 1, 1]} : vector<18x18x4xbf16> to vector<16x16x4xbf16>
    %8 = vector.shape_cast %7 : vector<16x16x4xbf16> to vector<256x4xbf16>
    %c0_9 = arith.constant 0 : index
    %c4 = arith.constant 4 : index
    %9 = vector.load %arg5[%c0_9, %c4] : memref<256x36xbf16, #tpu.memory_space<vmem>>, vector<256x4xbf16>
    tpu.vector_store %arg5[%c0_9, %c4], %8 {strides = array<i32>} : memref<256x36xbf16, #tpu.memory_space<vmem>>, vector<256x4xbf16>,
    %10 = vector.extract_strided_slice %3 {offsets = [0, 2, 0], sizes = [16, 16, 4], strides = [1, 1, 1]} : vector<18x18x4xbf16> to vector<16x16x4xbf16>
    %11 = vector.shape_cast %10 : vector<16x16x4xbf16> to vector<256x4xbf16>
    %c0_10 = arith.constant 0 : index
    %c8 = arith.constant 8 : index
    %12 = vector.load %arg5[%c0_10, %c8] : memref<256x36xbf16, #tpu.memory_space<vmem>>, vector<256x4xbf16>
    tpu.vector_store %arg5[%c0_10, %c8], %11 {strides = array<i32>} : memref<256x36xbf16, #tpu.memory_space<vmem>>, vector<256x4xbf16>,
    %13 = vector.extract_strided_slice %3 {offsets = [1, 0, 0], sizes = [16, 16, 4], strides = [1, 1, 1]} : vector<18x18x4xbf16> to vector<16x16x4xbf16>
    %14 = vector.shape_cast %13 : vector<16x16x4xbf16> to vector<256x4xbf16>
    %c0_11 = arith.constant 0 : index
    %c12 = arith.constant 12 : index
    %15 = vector.load %arg5[%c0_11, %c12] : memref<256x36xbf16, #tpu.memory_space<vmem>>, vector<256x4xbf16>
    tpu.vector_store %arg5[%c0_11, %c12], %14 {strides = array<i32>} : memref<256x36xbf16, #tpu.memory_space<vmem>>, vector<256x4xbf16>,
    %16 = vector.extract_strided_slice %3 {offsets = [1, 1, 0], sizes = [16, 16, 4], strides = [1, 1, 1]} : vector<18x18x4xbf16> to vector<16x16x4xbf16>
    %17 = vector.shape_cast %16 : vector<16x16x4xbf16> to vector<256x4xbf16>
    %c0_12 = arith.constant 0 : index
    %c16 = arith.constant 16 : index
    %18 = vector.load %arg5[%c0_12, %c16] : memref<256x36xbf16, #tpu.memory_space<vmem>>, vector<256x4xbf16>
    tpu.vector_store %arg5[%c0_12, %c16], %17 {strides = array<i32>} : memref<256x36xbf16, #tpu.memory_space<vmem>>, vector<256x4xbf16>,
    %19 = vector.extract_strided_slice %3 {offsets = [1, 2, 0], sizes = [16, 16, 4], strides = [1, 1, 1]} : vector<18x18x4xbf16> to vector<16x16x4xbf16>
    %20 = vector.shape_cast %19 : vector<16x16x4xbf16> to vector<256x4xbf16>
    %c0_13 = arith.constant 0 : index
    %c20 = arith.constant 20 : index
    %21 = vector.load %arg5[%c0_13, %c20] : memref<256x36xbf16, #tpu.memory_space<vmem>>, vector<256x4xbf16>
    tpu.vector_store %arg5[%c0_13, %c20], %20 {strides = array<i32>} : memref<256x36xbf16, #tpu.memory_space<vmem>>, vector<256x4xbf16>,
    %22 = vector.extract_strided_slice %3 {offsets = [2, 0, 0], sizes = [16, 16, 4], strides = [1, 1, 1]} : vector<18x18x4xbf16> to vector<16x16x4xbf16>
    %23 = vector.shape_cast %22 : vector<16x16x4xbf16> to vector<256x4xbf16>
    %c0_14 = arith.constant 0 : index
    %c24 = arith.constant 24 : index
    %24 = vector.load %arg5[%c0_14, %c24] : memref<256x36xbf16, #tpu.memory_space<vmem>>, vector<256x4xbf16>
    tpu.vector_store %arg5[%c0_14, %c24], %23 {strides = array<i32>} : memref<256x36xbf16, #tpu.memory_space<vmem>>, vector<256x4xbf16>,
    %25 = vector.extract_strided_slice %3 {offsets = [2, 1, 0], sizes = [16, 16, 4], strides = [1, 1, 1]} : vector<18x18x4xbf16> to vector<16x16x4xbf16>
    %26 = vector.shape_cast %25 : vector<16x16x4xbf16> to vector<256x4xbf16>
    %c0_15 = arith.constant 0 : index
    %c28 = arith.constant 28 : index
    %27 = vector.load %arg5[%c0_15, %c28] : memref<256x36xbf16, #tpu.memory_space<vmem>>, vector<256x4xbf16>
    tpu.vector_store %arg5[%c0_15, %c28], %26 {strides = array<i32>} : memref<256x36xbf16, #tpu.memory_space<vmem>>, vector<256x4xbf16>,
    %28 = vector.extract_strided_slice %3 {offsets = [2, 2, 0], sizes = [16, 16, 4], strides = [1, 1, 1]} : vector<18x18x4xbf16> to vector<16x16x4xbf16>
    %29 = vector.shape_cast %28 : vector<16x16x4xbf16> to vector<256x4xbf16>
    %c0_16 = arith.constant 0 : index
    %c32 = arith.constant 32 : index
    %30 = vector.load %arg5[%c0_16, %c32] : memref<256x36xbf16, #tpu.memory_space<vmem>>, vector<256x4xbf16>
    tpu.vector_store %arg5[%c0_16, %c32], %29 {strides = array<i32>} : memref<256x36xbf16, #tpu.memory_space<vmem>>, vector<256x4xbf16>,
    %c0_17 = arith.constant 0 : index
    %c0_18 = arith.constant 0 : index
    %31 = vector.load %arg5[%c0_17, %c0_18] : memref<256x36xbf16, #tpu.memory_space<vmem>>, vector<256x36xbf16>
    %cst = arith.constant dense<0.000000e+00> : vector<256x128xf32>
    %32 = tpu.matmul %31, %0, %cst {dimension_numbers = #tpu.dot_dimension_numbers<[1], [0], [0], [1], [0, 0, 1, 1], [], []>} : vector<256x36xbf16>, vector<36x128xbf16>, vector<256x128xf32> -> vector<256x128xf32>
    %33 = vector.broadcast %1 : vector<1x128xf32> to vector<256x128xf32>
    %34 = arith.addf %32, %33 : vector<256x128xf32>
    %c0_19 = arith.constant 0 : index
    %c0_20 = arith.constant 0 : index
    %c0_21 = arith.constant 0 : index
    %35 = vector.load %arg4[%c0_19, %c0_20, %c0_21] : memref<1x256x128xf32, #tpu.memory_space<vmem>>, vector<1x256x128xf32>
    %36 = vector.shape_cast %35 : vector<1x256x128xf32> to vector<256x128xf32>
    %37 = vector.shape_cast %34 : vector<256x128xf32> to vector<1x256x128xf32>
    tpu.vector_store %arg4[%c0_19, %c0_20, %c0_21], %37 {strides = array<i32>} : memref<1x256x128xf32, #tpu.memory_space<vmem>>, vector<1x256x128xf32>,
    return
  }
  func.func @transform_0(%arg0: i32) -> (i32, i32, i32, i32) {
    %c0_i32 = arith.constant 0 : i32
    %c0_i32_0 = arith.constant 0 : i32
    %c0_i32_1 = arith.constant 0 : i32
    %c0_i32_2 = arith.constant 0 : i32
    return %arg0, %c0_i32, %c0_i32_0, %c0_i32_1 : i32, i32, i32, i32
  }
  func.func @transform_1(%arg0: i32) -> (i32, i32) {
    %c0_i32 = arith.constant 0 : i32
    %c0_i32_0 = arith.constant 0 : i32
    %c0_i32_1 = arith.constant 0 : i32
    return %c0_i32, %c0_i32_0 : i32, i32
  }
  func.func @transform_2(%arg0: i32) -> (i32, i32) {
    %c0_i32 = arith.constant 0 : i32
    %c0_i32_0 = arith.constant 0 : i32
    %c0_i32_1 = arith.constant 0 : i32
    return %c0_i32, %c0_i32_0 : i32, i32
  }
  func.func @transform_3(%arg0: i32) -> (i32, i32, i32) {
    %c0_i32 = arith.constant 0 : i32
    %c0_i32_0 = arith.constant 0 : i32
    %c0_i32_1 = arith.constant 0 : i32
    return %arg0, %c0_i32, %c0_i32_0 : i32, i32, i32
  }
}

</mosaic_0001>

<bundles_post_ra>
// kernel: conv2d_pallas.1
= control target key start
LH: loop header
LB: loop body
LE: loop exit
PB: predicated region body
PF: predicated region fallthrough
CT: control target
= control target key end

     0   :  { %s2143_s12 = smov 0   ;;  %s3258_s0 = inlined_call_operand.vmem [shape: bf16[2,18,18,4], index: 0, kind: input, shape index: {}]   ;;  %s3259_s1 = inlined_call_operand.vmem [shape: bf16[36,128], index: 1, kind: input, shape index: {}]   ;;  %s3260_s2 = inlined_call_operand.vmem [shape: f32[1,128], index: 2, kind: input, shape index: {}]   ;;  %s3261_s3 = inlined_call_operand.vmem [shape: f32[2,256,128], index: 3, kind: output, shape index: {}]  }
   0x1 LB: > { %s1903_s13 = sadd.s32 4294967295, %s2113_s12   ;;  %p1907_p0 = scmp.ge.s32.totalorder %s2113_s12, 1  ;;  %s2113_s12 = sphi %s2143_s12, %s13_s12  }
   0x2   : > { %p137_p1 = scmp.lt.s32.totalorder %s2113_s12, 3 }
   0x4   : > { %p138_p2 = pnand %p1907_p0, %p137_p1 }
   0x6   : > { %141 = sbr.rel (%p138_p2) target bundleno = 630 (0x276), region = 32 }
   0xd   : > { %p161_p3 = scmp.lt.s32.totalorder %s1903_s13, 1  ;;  %vm328_vm0 = vcmask 31744   ;;  %vm861_vm1 = vcmask 1042432   ;;  %vm862_vm2 = vcmask 1046532   ;;  %vm345_vm3 = vsmask.f32 3328 }
   0xe   : > { %vm346_vm4 = vsmask.f32 7440  ;;  %s2115_s18 = smov 12   ;;  %vm2189_vm5 = vmor %vm861_vm1, %vm862_vm2  ;;  %s2116_s19 = smov 8   ;;  %vm1651_vm7 = vcmask 1041408   ;;  %vm828_vm8 = vcmask 64544  }
   0xf   : > { %s3297_s13 = smov (!%p161_p3, %s1903_s13), 1  ;;  %vm2234_vm6 = vmor %vm345_vm3, %vm346_vm4  ;;  %s2117_s20 = smov 4   ;;  %vm1072_vm9 = vcmask 97344   ;;  %vm1142_vm10 = vcmask 130144   ;;  %vm1234_vm11 = vcmask 162944   ;;  %vm1310_vm12 = vcmask 195744  }
  0x10   : > { %s2071_s14 = smul.u32 216, %s3297_s13  ;;  %s2118_s21 = smov 16   ;;  %vm1380_vm13 = vcmask 228544   ;;  %vm1472_vm14 = vcmask 261344   ;;  %vm1548_vm15 = vcmask 294144  }
  0x11   : > { %s2119_s22 = smov 20   ;;  %s2120_s23 = smov 24  }
  0x12   : > { %s2157_s17 = scalar_lea.vmem %s3258_s0, %s2071_s14  ;;  %s2121_s24 = smov 28  }
  0x13   : > { %v2160_v0 = vld [vmem:[%s2157_s17 + $0x6c] sm:$0xf]  ;;  %v2163_v1 = vld [vmem:[%s2157_s17 + $0x70] sm:$0xf]  ;;  %v2175_v12 = vld [vmem:[%s2157_s17 + $0x60] sm:$0xf] }
  0x14   : > { %v181_v2 = vld [vmem:[%s2157_s17 + $0xc] sm:$0xf]  ;;  %v2168_v3 = vcombine.low %v2160_v0, %v2163_v1  ;;  %v565_v4 = vshrl.u32 %v2160_v0, 16  ;;  %v568_v5 = vshll.u32 %v2160_v0, 16  ;;  %v578_v6 = vshrl.u32 %v2163_v1, 16  ;;  %s2122_s27 = smov 32  }
  0x15   : > { %v182_v7 = vld [vmem:[%s2157_s17 + $0x10] sm:$0xf]  ;;  %v373_v9 = vshrl.u32 %v181_v2, 16  ;;  %v376_v10 = vshll.u32 %v181_v2, 16  ;;  %v2182_v14 = vld [vmem:[%s2157_s17 + $0x64] sm:$0xf] }
  0x16   : > { %3273 = vst [vmem:[#allocation3_spill] sm:$0xff] %v2168_v3  ;;  %v1912_v8 = vcombine.low %v181_v2, %v182_v7  ;;  %v382_v11 = vshll.u32 %v182_v7, 16  ;;  %1110 = vrot.lane.b32.xlu1 %v2168_v3, %s2115_s18  ;;  %v386_v13 = vshrl.u32 %v182_v7, 16  ;;  %338 = vst.msk [vmem:[#allocation2 + $0x48] sm:$0xff] %vm328_vm0, %v2168_v3  ;;  %v2185_v15 = vld [vmem:[%s2157_s17 + $0x68] sm:$0x1] }
  0x17   : > { %v1951_v17 = vrot.slane %v2175_v12, 9  ;;  %v375_v18 = vrot.slane %v373_v9, 4  ;;  %v378_v19 = vrot.slane %v376_v10, 5  ;;  %v922_v20 = vrot.slane %v2182_v14, 5  ;;  %v2199_v22 = vld [vmem:[%s2157_s17] sm:$0xf] }
  0x18   : > { %1094 = vrot.lane.b32.xlu0 %v1912_v8, %s2115_s18  ;;  %330 = vst.msk [vmem:[#allocation2 + $0x8] sm:$0xff] %vm328_vm0, %v1912_v8  ;;  %v925_v21 = vrot.slane %v2185_v15, 5  ;;  %v388_v23 = vrot.slane %v386_v13, 4  ;;  %v2202_v24 = vld [vmem:[%s2157_s17 + $0x4] sm:$0xf]  ;;  %v1943_v26 = vrot.slane %v2199_v22, 9 }
  0x19   : > { %v180_v25 = vld [vmem:[%s2157_s17 + $0x8] sm:$0x1]  ;;  %v923_v27 = vsel %vm2189_vm5, %v1951_v17, %v922_v20  ;;  %v924_v28 = vrot.slane %v922_v20, 4  ;;  %v866_v29 = vrot.slane %v2202_v24, 5  ;;  %v2210_v31 = vld [vmem:[%s2157_s17 + $0x74] sm:$0x1]  ;;  %v379_v48 = vor.u32 %v378_v19, %v375_v18 }
  0x1a   : > { %v869_v30 = vrot.slane %v180_v25, 5  ;;  %v1952_v32 = vrot.slane %v2160_v0, 9  ;;  %v929_v33 = vrot.slane %v2163_v1, 5  ;;  %v932_v34 = vrot.slane %v2210_v31, 5  ;;  %v183_v35 = vld [vmem:[%s2157_s17 + $0x14] sm:$0x1] }
  0x1b   : > { %v1944_v36 = vrot.slane %v181_v2, 9  ;;  %v926_v37 = vsel %vm2189_vm5, %v924_v28, %v925_v21  ;;  %v867_v38 = vsel %vm2189_vm5, %v1943_v26, %v866_v29  ;;  %v868_v39 = vrot.slane %v866_v29, 4  ;;  %s2005_s5 = sshll.u32 %s3297_s13, 8 }
  0x1c   : > { %v873_v40 = vrot.slane %v182_v7, 5  ;;  %v2220_v41 = vcombine.low %v923_v27, %v926_v37  ;;  %v930_v42 = vsel %vm2189_vm5, %v1952_v32, %v929_v33  ;;  %v931_v43 = vrot.slane %v929_v33, 4  ;;  %s3189_s10 = scalar_lea.vmem %s3261_s3, %s2005_s5 }
  0x1d   : > { %v876_v44 = vrot.slane %v183_v35, 5  ;;  %v870_v45 = vsel %vm2189_vm5, %v868_v39, %v869_v30  ;;  %v384_v52 = vrot.slane %v382_v11, 5  ;;  %v392_v53 = vshll.u32 %v183_v35, 16 }
  0x1e   : > { %3276 = vst [vmem:[#allocation4_spill] sm:$0xff] %v2220_v41  ;;  %v874_v46 = vsel %vm2189_vm5, %v1944_v36, %v873_v40  ;;  %v875_v47 = vrot.slane %v873_v40, 4  ;;  %1040 = vrot.lane.b32.xlu1 %v2220_v41, %s2116_s19  ;;  %v1959_v49 = vcombine.low %v867_v38, %v870_v45  ;;  %v933_v50 = vsel %vm2189_vm5, %v931_v43, %v932_v34  ;;  %v2273_v34 = vld [vmem:[%s2157_s17 + $0x78] sm:$0xf]  ;;  %v2278_v38 = vld [vmem:[%s2157_s17 + $0x7c] sm:$0xf] }
  0x1f   : > { %v2238_v54 = vcombine.low %v930_v42, %v933_v50  ;;  %v380_v56 = vrot.slane %v379_v48, 4  ;;  %v349_v57 = vshrl.u32 %v2199_v22, 16  ;;  %v389_v59 = vor.u32 %v388_v23, %v384_v52  ;;  %v2287_v48 = vld [vmem:[%s2157_s17 + $0x18] sm:$0xf] }
  0x20   : > { %v877_v55 = vsel %vm2189_vm5, %v875_v47, %v876_v44  ;;  %1024 = vrot.lane.b32.xlu0 %v1959_v49, %s2116_s19  ;;  %v394_v60 = vrot.slane %v392_v53, 5  ;;  %v352_v61 = vshll.u32 %v2199_v22, 16  ;;  %v358_v2 = vshll.u32 %v2202_v24, 16  ;;  %v2290_v49 = vld [vmem:[%s2157_s17 + $0x1c] sm:$0xf] }
  0x21   : > { %3279 = vst [vmem:[#allocation5_spill] sm:$0xff] %v2238_v54  ;;  %v2244_v58 = vcombine.low %v874_v46, %v877_v55  ;;  %v385_v62 = vsel %vm2234_vm6, %v380_v56, %v384_v52  ;;  %v351_v63 = vrot.slane %v349_v57, 4  ;;  %v362_v7 = vshrl.u32 %v2202_v24, 16 }
  0x22   : > { %1042 = vrot.lane.b32.xlu1 %v2238_v54, %s2116_s19  ;;  %v390_v8 = vrot.slane %v389_v59, 4  ;;  %v354_v9 = vrot.slane %v352_v61, 5  ;;  %v368_v10 = vshll.u32 %v180_v25, 16  ;;  %v567_v11 = vrot.slane %v565_v4, 4 }
  0x23   : > { %v360_v13 = vrot.slane %v358_v2, 5  ;;  %v364_v17 = vrot.slane %v362_v7, 4  ;;  %v570_v18 = vrot.slane %v568_v5, 5  ;;  %v574_v19 = vshll.u32 %v2163_v1, 16 }
  0x24   : > { %1026 = vrot.lane.b32.xlu0 %v2244_v58, %s2116_s19  ;;  %v395_v20 = vsel %vm2234_vm6, %v390_v8, %v394_v60  ;;  %v355_v21 = vor.u32 %v354_v9, %v351_v63  ;;  %v370_v23 = vrot.slane %v368_v10, 5  ;;  %v580_v25 = vrot.slane %v578_v6, 4  ;;  %v2304_v60 = vld [vmem:[%s2157_s17 + $0x80] sm:$0x1] }
  0x25   : > { %v2264_v4 = vcombine.low %v385_v62, %v395_v20  ;;  %v365_v26 = vor.u32 %v364_v17, %v360_v13  ;;  %v571_v27 = vor.u32 %v570_v18, %v567_v11  ;;  %v576_v0 = vrot.slane %v574_v19, 5  ;;  %v2325_v19 = vld [vmem:[%s2157_s17 + $0x20] sm:$0x1] }
  0x26   : > { %v356_v5 = vrot.slane %v355_v21, 4  ;;  %v584_v28 = vshll.u32 %v2210_v31, 16  ;;  %v541_v29 = vshrl.u32 %v2175_v12, 16  ;;  %v544_v30 = vshll.u32 %v2175_v12, 16 }
  0x27   : > { %782 = vrot.lane.b32.xlu1 %v2264_v4, %s2117_s20  ;;  %v366_v1 = vrot.slane %v365_v26, 4  ;;  %v572_v32 = vrot.slane %v571_v27, 4  ;;  %v581_v6 = vor.u32 %v580_v25, %v576_v0  ;;  %v550_v33 = vshll.u32 %v2182_v14, 16 }
  0x28   : > { %v361_v31 = vsel %vm2234_vm6, %v356_v5, %v360_v13  ;;  %v586_v35 = vrot.slane %v584_v28, 5  ;;  %v543_v36 = vrot.slane %v541_v29, 4  ;;  %v546_v37 = vrot.slane %v544_v30, 5 }
  0x29   : > { %v371_v39 = vsel %vm2234_vm6, %v366_v1, %v370_v23  ;;  %v577_v40 = vsel %vm2234_vm6, %v572_v32, %v576_v0  ;;  %v582_v42 = vrot.slane %v581_v6, 4  ;;  %v552_v43 = vrot.slane %v550_v33, 5 }
  0x2a   : > { %v1927_v44 = vcombine.low %v361_v31, %v371_v39  ;;  %v547_v45 = vor.u32 %v546_v37, %v543_v36  ;;  %v554_v46 = vshrl.u32 %v2182_v14, 16  ;;  %v560_v47 = vshll.u32 %v2185_v15, 16  ;;  %v2337_v36 = vld [vmem:[%s2157_s17 + $0x84] sm:$0xf]  ;;  %v2340_v37 = vld [vmem:[%s2157_s17 + $0x88] sm:$0xf] }
  0x2b   : > { %v587_v50 = vsel %vm2234_vm6, %v582_v42, %v586_v35  ;;  %v2296_v52 = vcombine.low %v2273_v34, %v2278_v38  ;;  %v589_v53 = vshrl.u32 %v2273_v34, 16  ;;  %v592_v55 = vshll.u32 %v2273_v34, 16 }
  0x2c   : > { %780 = vrot.lane.b32.xlu0 %v1927_v44, %s2117_s20  ;;  %v2301_v56 = vcombine.low %v577_v40, %v587_v50  ;;  %v548_v15 = vrot.slane %v547_v45, 4  ;;  %v556_v57 = vrot.slane %v554_v46, 4  ;;  %v562_v59 = vrot.slane %v560_v47, 5 }
  0x2d   : > { %v602_v61 = vshrl.u32 %v2278_v38, 16  ;;  %339 = vst.msk [vmem:[#allocation2 + $0x50] sm:$0xff] %vm328_vm0, %v2296_v52  ;;  %v2311_v62 = vcombine.low %v2287_v48, %v2290_v49  ;;  %v397_v63 = vshrl.u32 %v2287_v48, 16  ;;  %v400_v2 = vshll.u32 %v2287_v48, 16 }
  0x2e   : > { %3280 = vst [vmem:[#allocation6_spill] sm:$0xff] %v2301_v56  ;;  %798 = vrot.lane.b32.xlu1 %v2301_v56, %s2117_s20  ;;  %v553_v7 = vsel %vm2234_vm6, %v548_v15, %v552_v43  ;;  %v557_v8 = vor.u32 %v556_v57, %v552_v43  ;;  %v410_v9 = vshrl.u32 %v2290_v49, 16  ;;  %v591_v10 = vrot.slane %v589_v53, 4  ;;  %v2357_v53 = vld [vmem:[%s2157_s17 + $0x24] sm:$0xf] }
  0x2f   : > { %331 = vst.msk [vmem:[#allocation2 + $0x10] sm:$0xff] %vm328_vm0, %v2311_v62  ;;  %v594_v11 = vrot.slane %v592_v55, 5  ;;  %v598_v13 = vshll.u32 %v2278_v38, 16  ;;  %v604_v17 = vrot.slane %v602_v61, 4  ;;  %v608_v18 = vshll.u32 %v2304_v60, 16 }
  0x30   : > { %v558_v20 = vrot.slane %v557_v8, 4  ;;  %v399_v21 = vrot.slane %v397_v63, 4  ;;  %v402_v23 = vrot.slane %v400_v2, 5  ;;  %v406_v25 = vshll.u32 %v2290_v49, 16  ;;  %v2360_v55 = vld [vmem:[%s2157_s17 + $0x28] sm:$0xf] }
  0x31   : > { %v595_v26 = vor.u32 %v594_v11, %v591_v10  ;;  %v600_v27 = vrot.slane %v598_v13, 5  ;;  %v412_v0 = vrot.slane %v410_v9, 4  ;;  %v416_v30 = vshll.u32 %v2325_v19, 16 }
  0x32   : > { %v563_v5 = vsel %vm2234_vm6, %v558_v20, %v562_v59  ;;  %1112 = vrot.lane.b32.xlu1 %v2296_v52, %s2115_s18  ;;  %v403_v28 = vor.u32 %v402_v23, %v399_v21  ;;  %v408_v29 = vrot.slane %v406_v25, 5  ;;  %v610_v33 = vrot.slane %v608_v18, 5 }
  0x33   : > { %v2333_v1 = vcombine.low %v553_v7, %v563_v5  ;;  %v596_v32 = vrot.slane %v595_v26, 4  ;;  %v605_v6 = vor.u32 %v604_v17, %v600_v27  ;;  %v936_v35 = vrot.slane %v2278_v38, 5  ;;  %v2408_v26 = vld [vmem:[%s2157_s17 + $0x90] sm:$0xf] }
  0x34   : > { %v413_v31 = vor.u32 %v412_v0, %v408_v29  ;;  %v404_v42 = vrot.slane %v403_v28, 4  ;;  %v418_v38 = vrot.slane %v416_v30, 5  ;;  %v1953_v44 = vrot.slane %v2273_v34, 9 }
  0x35   : > { %3281 = vst [vmem:[#allocation7_spill] sm:$0xff] %v2333_v1  ;;  %796 = vrot.lane.b32.xlu0 %v2333_v1, %s2117_s20  ;;  %v601_v39 = vsel %vm2234_vm6, %v596_v32, %v600_v27  ;;  %v606_v40 = vrot.slane %v605_v6, 4  ;;  %v938_v46 = vrot.slane %v936_v35, 4  ;;  %v939_v47 = vrot.slane %v2304_v60, 5  ;;  %v2411_v27 = vld [vmem:[%s2157_s17 + $0x94] sm:$0xf] }
  0x36   : > { %1202 = vrot.lane.b32.xlu1 %v2301_v56, %s2118_s21  ;;  %v414_v43 = vrot.slane %v413_v31, 4  ;;  %v2354_v50 = vcombine.low %v2337_v36, %v2340_v37  ;;  %v409_v34 = vsel %vm2234_vm6, %v404_v42, %v408_v29  ;;  %v937_v59 = vsel %vm2189_vm5, %v1953_v44, %v936_v35  ;;  %v2429_v31 = vld [vmem:[%s2157_s17 + $0x34] sm:$0xf] }
  0x37   : > { %v611_v45 = vsel %vm2234_vm6, %v606_v40, %v610_v33  ;;  %v880_v60 = vrot.slane %v2290_v49, 5  ;;  %v2379_v61 = vcombine.low %v2357_v53, %v2360_v55  ;;  %v940_v63 = vsel %vm2189_vm5, %v938_v46, %v939_v47  ;;  %v2426_v33 = vld [vmem:[%s2157_s17 + $0x30] sm:$0xf] }
  0x38   : > { %v2362_v15 = vcombine.low %v601_v39, %v611_v45  ;;  %340 = vst.msk [vmem:[#allocation2 + $0x58] sm:$0xff] %vm328_vm0, %v2354_v50  ;;  %v419_v57 = vsel %vm2234_vm6, %v414_v43, %v418_v38  ;;  %v613_v2 = vshrl.u32 %v2337_v36, 16  ;;  %v616_v7 = vshll.u32 %v2337_v36, 16  ;;  %v2438_v39 = vld [vmem:[%s2157_s17 + $0x2c] sm:$0x1] }
  0x39   : > { %1096 = vrot.lane.b32.xlu0 %v2311_v62, %s2115_s18  ;;  %v626_v8 = vshrl.u32 %v2340_v37, 16  ;;  %332 = vst.msk [vmem:[#allocation2 + $0x18] sm:$0xff] %vm328_vm0, %v2379_v61  ;;  %v622_v9 = vshll.u32 %v2340_v37, 16  ;;  %v2391_v49 = vcombine.low %v409_v34, %v419_v57  ;;  %v1945_v10 = vrot.slane %v2287_v48, 9 }
  0x3a   : > { %1204 = vrot.lane.b32.xlu1 %v2362_v15, %s2118_s21  ;;  %v2396_v11 = vcombine.low %v937_v59, %v940_v63  ;;  %v882_v13 = vrot.slane %v880_v60, 4  ;;  %v883_v17 = vrot.slane %v2325_v19, 5  ;;  %v615_v18 = vrot.slane %v613_v2, 4  ;;  %v2463_v2 = vld [vmem:[%s2157_s17 + $0x9c] sm:$0xf] }
  0x3b   : > { %v618_v20 = vrot.slane %v616_v7, 5  ;;  %v624_v21 = vrot.slane %v622_v9, 5  ;;  %v628_v23 = vrot.slane %v626_v8, 4  ;;  %v881_v48 = vsel %vm2189_vm5, %v1945_v10, %v880_v60 }
  0x3c   : > { %v421_v25 = vshrl.u32 %v2357_v53, 16  ;;  %v884_v19 = vsel %vm2189_vm5, %v882_v13, %v883_v17  ;;  %v424_v0 = vshll.u32 %v2357_v53, 16  ;;  %v434_v5 = vshrl.u32 %v2360_v55, 16  ;;  %v2471_v13 = vld [vmem:[%s2157_s17 + $0xa0] sm:$0xf] }
  0x3d   : > { %1186 = vrot.lane.b32.xlu0 %v2264_v4, %s2118_s21  ;;  %v2400_v4 = vld [vmem:[%s2157_s17 + $0x8c] sm:$0x1]  ;;  %v430_v28 = vshll.u32 %v2360_v55, 16  ;;  %v619_v29 = vor.u32 %v618_v20, %v615_v18  ;;  %v629_v30 = vor.u32 %v628_v23, %v624_v21  ;;  %v2423_v6 = vcombine.low %v2408_v26, %v2411_v27 }
  0x3e   : > { %1278 = vrot.lane.b32.xlu1 %v2238_v54, %s2119_s22  ;;  %v632_v32 = vshll.u32 %v2400_v4, 16  ;;  %v2433_v35 = vcombine.low %v881_v48, %v884_v19  ;;  %v423_v40 = vrot.slane %v421_v25, 4  ;;  %v426_v42 = vrot.slane %v424_v0, 5  ;;  %v2482_v48 = vld [vmem:[%s2157_s17 + $0x3c] sm:$0xf] }
  0x3f   : > { %v2440_v43 = vrot.slane %v430_v28, 5  ;;  %v436_v38 = vrot.slane %v434_v5, 4  ;;  %341 = vst.msk [vmem:[#allocation2 + $0x60] sm:$0xff] %vm328_vm0, %v2423_v6  ;;  %v620_v44 = vrot.slane %v619_v29, 4  ;;  %v630_v45 = vrot.slane %v629_v30, 4 }
  0x40   : > { %v2446_v46 = vcombine.low %v2426_v33, %v2429_v31  ;;  %v427_v47 = vor.u32 %v426_v42, %v423_v40  ;;  %v637_v60 = vshrl.u32 %v2408_v26, 16  ;;  %v640_v63 = vshll.u32 %v2408_v26, 16  ;;  %v2490_v28 = vld [vmem:[%s2157_s17 + $0x40] sm:$0xf] }
  0x41   : > { %1188 = vrot.lane.b32.xlu0 %v2391_v49, %s2118_s21  ;;  %v437_v34 = vor.u32 %v436_v38, %v2440_v43  ;;  %v625_v57 = vsel %vm2234_vm6, %v620_v44, %v624_v21  ;;  %v943_v8 = vrot.slane %v2340_v37, 5  ;;  %v650_v9 = vshrl.u32 %v2411_v27, 16  ;;  %v2506_v38 = vld [vmem:[%s2157_s17 + $0x98] sm:$0x1] }
  0x42   : > { %1280 = vrot.lane.b32.xlu1 %v2396_v11, %s2119_s22  ;;  %333 = vst.msk [vmem:[#allocation2 + $0x20] sm:$0xff] %vm328_vm0, %v2446_v46  ;;  %v646_v10 = vshll.u32 %v2411_v27, 16  ;;  %v428_v18 = vrot.slane %v427_v47, 4  ;;  %v1954_v21 = vrot.slane %v2337_v36, 9  ;;  %v445_v37 = vshrl.u32 %v2426_v33, 16 }
  0x43   : > { %v438_v20 = vrot.slane %v437_v34, 4  ;;  %v448_v23 = vshll.u32 %v2426_v33, 16  ;;  %v946_v25 = vrot.slane %v2400_v4, 5  ;;  %v639_v19 = vrot.slane %v637_v60, 4  ;;  %v2514_v44 = vld [vmem:[%s2157_s17 + $0x38] sm:$0x1] }
  0x44   : > { %v642_v0 = vrot.slane %v640_v63, 5  ;;  %v2487_v5 = vcombine.low %v2463_v2, %v2471_v13  ;;  %v945_v36 = vrot.slane %v943_v8, 4  ;;  %v2495_v29 = vrot.slane %v646_v10, 5  ;;  %v2103_v10 = vld [vmem:[%s3259_s1 + $0x8] sm:$0xff]  }
  0x45   : > { %1262 = vrot.lane.b32.xlu0 %v2244_v58, %s2119_s22  ;;  %v634_v58 = vrot.slane %v632_v32, 5  ;;  %v652_v30 = vrot.slane %v650_v9, 4  ;;  %v433_v4 = vsel %vm2234_vm6, %v428_v18, %v2440_v43  ;;  %v890_v42 = vrot.slane %v2438_v39, 5 }
  0x46   : > { %1348 = vrot.lane.b32.xlu1 %v2296_v52, %s2120_s23  ;;  %v440_v52 = vshll.u32 %v2438_v39, 16  ;;  %342 = vst.msk [vmem:[#allocation2 + $0x68] sm:$0xff] %vm328_vm0, %v2487_v5  ;;  %v2518_v43 = vcombine.low %v2482_v48, %v2490_v28  ;;  %v944_v39 = vsel %vm2189_vm5, %v1954_v21, %v943_v8  ;;  %v643_v47 = vor.u32 %v642_v0, %v639_v19 }
  0x47   : > { %v635_v59 = vsel %vm2234_vm6, %v630_v45, %v634_v58  ;;  %v447_v45 = vrot.slane %v445_v37, 4  ;;  %v450_v58 = vrot.slane %v448_v23, 5  ;;  %v454_v34 = vshll.u32 %v2429_v31, 16 }
  0x48   : > { %v442_v7 = vrot.slane %v440_v52, 5  ;;  %v2475_v17 = vcombine.low %v625_v57, %v635_v59  ;;  %v458_v52 = vshrl.u32 %v2429_v31, 16  ;;  %v947_v59 = vsel %vm2189_vm5, %v945_v36, %v946_v25  ;;  %334 = vst.msk [vmem:[#allocation2 + $0x28] sm:$0xff] %vm328_vm0, %v2518_v43 }
  0x49   : > { %1264 = vrot.lane.b32.xlu0 %v2433_v35, %s2119_s22  ;;  %v653_v60 = vor.u32 %v652_v30, %v2495_v29  ;;  %v656_v63 = vshll.u32 %v2506_v38, 16  ;;  %v464_v9 = vshll.u32 %v2514_v44, 16  ;;  %v451_v18 = vor.u32 %v450_v58, %v447_v45  ;;  %v2559_v30 = vld [vmem:[%s2157_s17 + $0xa4] sm:$0x1] }
  0x4a   : > { %1350 = vrot.lane.b32.xlu1 %v2354_v50, %s2120_s23  ;;  %v443_v32 = vsel %vm2234_vm6, %v438_v20, %v442_v7  ;;  %v2544_v20 = vcombine.low %v944_v39, %v947_v59  ;;  %v644_v21 = vrot.slane %v643_v47, 4  ;;  %v2546_v37 = vrot.slane %v454_v34, 5 }
  0x4b   : > { %v2526_v57 = vcombine.low %v433_v4, %v443_v32  ;;  %v460_v23 = vrot.slane %v458_v52, 4  ;;  %v654_v25 = vrot.slane %v653_v60, 4  ;;  %v658_v19 = vrot.slane %v656_v63, 5  ;;  %v2595_v60 = vld [vmem:[%s2157_s17 + $0xa8] sm:$0xf] }
  0x4c   : > { %v1955_v0 = vrot.slane %v2408_v26, 9  ;;  %v2555_v36 = vrot.slane %v464_v9, 5  ;;  %v1911_v4 = vcombine.low %v2199_v22, %v2202_v24  ;;  %v1956_v32 = vrot.slane %v2463_v2, 9  ;;  %v2574_v22 = vld [vmem:[%s2157_s17 + $0x44] sm:$0x1] }
  0x4d   : > { %1332 = vrot.lane.b32.xlu0 %v2311_v62, %s2120_s23  ;;  %v887_v62 = vrot.slane %v2360_v55, 5  ;;  %v1946_v55 = vrot.slane %v2357_v53, 9  ;;  %v2102_v53 = vld [vmem:[%s3259_s1] sm:$0xff]   ;;  %v953_v26 = vrot.slane %v2506_v38, 5  ;;  %v1948_v24 = vrot.slane %v2482_v48, 9 }
  0x4e   : > { %1440 = vrot.lane.b32.xlu1 %v2362_v15, %s2121_s24  ;;  %2025 = vmatprep.subr.bf16.mxu0 %v2102_v53  ;;  %329 = vst.msk [vmem:[#allocation2] sm:$0xff] %vm328_vm0, %v1911_v4  ;;  %v901_v38 = vrot.slane %v2490_v28, 5  ;;  %v659_v45 = vsel %vm2234_vm6, %v654_v25, %v658_v19  ;;  %v904_v39 = vrot.slane %v2574_v22, 5  ;;  %v221_v63 = vld [vmem:[%s2157_s17 + $0xac] sm:$0xf]  ;;  %v688_v4 = vshll.u32 %v2595_v60, 16 }
  0x4f   : > { %v889_v40 = vrot.slane %v887_v62, 4  ;;  %2063 = vmatprep.subr.bf16.mxu1 %v2102_v53  ;;  %2026 = vmatpush3.bf16.msra.mxu0 %v2102_v53  ;;  %v888_v7 = vsel %vm2189_vm5, %v1946_v55, %v887_v62  ;;  %v950_v55 = vrot.slane %v2411_v27, 5  ;;  %v649_v27 = vsel %vm2234_vm6, %v644_v21, %v2495_v29  ;;  %v2613_v21 = vld [vmem:[%s2157_s17 + $0x4c] sm:$0xf] }
  0x50   : > { %2066 = vmatpush3.bf16.msra.mxu1 %v2102_v53  ;;  %2027 = vmatprep.subr.bf16.mxu0 %v2103_v10  ;;  %v461_v53 = vor.u32 %v460_v23, %v2546_v37  ;;  %v902_v34 = vsel %vm2189_vm5, %v1948_v24, %v901_v38  ;;  %v903_v59 = vrot.slane %v901_v38, 4  ;;  %v2615_v23 = vcombine.low %v649_v27, %v659_v45 }
  0x51   : > { %1334 = vrot.lane.b32.xlu0 %v2379_v61, %s2120_s23  ;;  %v891_v8 = vsel %vm2189_vm5, %v889_v40, %v890_v42  ;;  %2064 = vmatprep.subr.bf16.mxu1 %v2103_v10  ;;  %v2564_v40 = vrot.slane %v451_v18, 4  ;;  %v957_v42 = vrot.slane %v2471_v13, 5  ;;  %v2590_v52 = vsel %vm2189_vm5, %v1955_v0, %v950_v55  ;;  %v2610_v18 = vld [vmem:[%s2157_s17 + $0x48] sm:$0xf] }
  0x52   : > { %1442 = vrot.lane.b32.xlu1 %v2475_v17, %s2121_s24  ;;  %v2550_v62 = vcombine.low %v888_v7, %v891_v8  ;;  %v952_v47 = vrot.slane %v950_v55, 4  ;;  %v2617_v25 = vrot.slane %v461_v53, 4  ;;  %v905_v0 = vsel %vm2189_vm5, %v903_v59, %v904_v39 }
  0x53   : > { %2028 = vmatpush3.bf16.msra.mxu0 %v2103_v10  ;;  %v958_v29 = vsel %vm2189_vm5, %v1956_v32, %v957_v42  ;;  %v959_v58 = vrot.slane %v957_v42, 4  ;;  %v2625_v55 = vcombine.low %v902_v34, %v905_v0  ;;  %v222_v32 = vld [vmem:[%s2157_s17 + $0xb0] sm:$0x1]  ;;  %v698_v42 = vshrl.u32 %v221_v63, 16 }
  0x54   : > { %2067 = vmatpush3.bf16.msra.mxu1 %v2103_v10  ;;  %v2607_v10 = vcombine.low %v2175_v12, %v2182_v14  ;;  %v2630_v12 = vcombine.low %v2595_v60, %v221_v63  ;;  %v685_v14 = vshrl.u32 %v2595_v60, 16  ;;  %v496_v27 = vshll.u32 %v2610_v18, 16 }
  0x55   : > { %1424 = vrot.lane.b32.xlu0 %v2391_v49, %s2121_s24  ;;  %v2645_v53 = vsel %vm2189_vm5, %v952_v47, %v953_v26  ;;  %v506_v24 = vshrl.u32 %v2613_v21, 16  ;;  %v690_v45 = vrot.slane %v688_v4, 5  ;;  %v700_v39 = vrot.slane %v698_v42, 4 }
  0x56   : > { %1516 = vrot.lane.b32.xlu1 %v2396_v11, %s2122_s27  ;;  %3282 = vst [vmem:[#allocation8_spill] sm:$0xff] %v2607_v10  ;;  %337 = vst.msk [vmem:[#allocation2 + $0x40] sm:$0xff] %vm328_vm0, %v2607_v10  ;;  %v687_v38 = vrot.slane %v685_v14, 4  ;;  %v704_v34 = vshll.u32 %v222_v32, 16  ;;  %v498_v47 = vrot.slane %v496_v27, 5  ;;  %v1957_v56 = vrot.slane %v2595_v60, 9 }
  0x57   : > { %343 = vst.msk [vmem:[#allocation2 + $0x70] sm:$0xff] %vm328_vm0, %v2630_v12  ;;  %v508_v0 = vrot.slane %v506_v24, 4  ;;  %v967_v3 = vrot.slane %v222_v32, 5  ;;  %v908_v32 = vrot.slane %v2613_v21, 5 }
  0x58   : > { %v691_v26 = vor.u32 %v690_v45, %v687_v38  ;;  %v706_v8 = vrot.slane %v704_v34, 5  ;;  %v964_v45 = vrot.slane %v221_v63, 5  ;;  %v1949_v34 = vrot.slane %v2610_v18, 9 }
  0x59   : > { %1426 = vrot.lane.b32.xlu0 %v2526_v57, %s2121_s24 }
  0x5a   : > { %800 = vrot.lane.b32.xlu1 %v2362_v15, %s2117_s20  ;;  %v960_v15 = vrot.slane %v2559_v30, 5  ;;  %v692_v42 = vrot.slane %v691_v26, 4 }
  0x5c   : > { %v961_v9 = vsel %vm2189_vm5, %v959_v58, %v960_v15  ;;  %v493_v15 = vshrl.u32 %v2610_v18, 16  ;;  %v694_v58 = vshll.u32 %v221_v63, 16  ;;  %v965_v63 = vsel %vm2189_vm5, %v1957_v56, %v964_v45 }
  0x5d   : > { %1500 = vrot.lane.b32.xlu0 %v2433_v35, %s2122_s27  ;;  %v2619_v19 = vcombine.low %v958_v29, %v961_v9  ;;  %v198_v29 = vld [vmem:[%s2157_s17 + $0x50] sm:$0x1]  ;;  %v502_v9 = vshll.u32 %v2613_v21, 16  ;;  %v909_v56 = vsel %vm2189_vm5, %v1949_v34, %v908_v32 }
  0x5e   : > { %1518 = vrot.lane.b32.xlu1 %v2544_v20, %s2122_s27  ;;  %v495_v59 = vrot.slane %v493_v15, 4  ;;  %v696_v4 = vrot.slane %v694_v58, 5  ;;  %v512_v7 = vshll.u32 %v198_v29, 16 }
  0x5f   : > { %v504_v15 = vrot.slane %v502_v9, 5 }
  0x60   : > { %v499_v54 = vor.u32 %v498_v47, %v495_v59  ;;  %v701_v38 = vor.u32 %v700_v39, %v696_v4  ;;  %v514_v27 = vrot.slane %v512_v7, 5  ;;  %v2666_v59 = vld [vmem:[%s2157_s17 + $0xb4] sm:$0xf]  ;;  %v966_v7 = vrot.slane %v964_v45, 4  ;;  %v2674_v39 = vld [vmem:[%s2157_s17 + $0xb8] sm:$0xf] }
  0x61   : > { %784 = vrot.lane.b32.xlu0 %v2391_v49, %s2117_s20  ;;  %v2639_v49 = vcombine.low %v2610_v18, %v2613_v21  ;;  %v509_v58 = vor.u32 %v508_v0, %v504_v15  ;;  %v911_v47 = vrot.slane %v198_v29, 5  ;;  %v910_v21 = vrot.slane %v908_v32, 4 }
  0x62   : > { %802 = vrot.lane.b32.xlu1 %v2475_v17, %s2117_s20  ;;  %v500_v24 = vrot.slane %v499_v54, 4  ;;  %v702_v60 = vrot.slane %v701_v38, 4  ;;  %v968_v0 = vsel %vm2189_vm5, %v966_v7, %v967_v3  ;;  %v2701_v3 = vcombine.low %v2666_v59, %v2674_v39 }
  0x63   : > { %335 = vst.msk [vmem:[#allocation2 + $0x30] sm:$0xff] %vm328_vm0, %v2639_v49  ;;  %v510_v26 = vrot.slane %v509_v58, 4  ;;  %v709_v45 = vshrl.u32 %v2666_v59, 16  ;;  %v722_v58 = vshrl.u32 %v2674_v39, 16 }
  0x64   : > { %v505_v18 = vsel %vm2234_vm6, %v500_v24, %v504_v15  ;;  %v707_v9 = vsel %vm2234_vm6, %v702_v60, %v706_v8  ;;  %v2697_v15 = vcombine.low %v965_v63, %v968_v0  ;;  %v2712_v24 = vld [vmem:[%s2157_s17 + $0xbc] sm:$0x1]  ;;  %344 = vst.msk [vmem:[#allocation2 + $0x78] sm:$0xff] %vm328_vm0, %v2701_v3  ;;  %v467_v63 = vsel %vm2234_vm6, %v2617_v25, %v2555_v36 }
  0x65   : > { %1502 = vrot.lane.b32.xlu0 %v2550_v62, %s2122_s27  ;;  %v515_v8 = vsel %vm2234_vm6, %v510_v26, %v514_v27  ;;  %v201_v60 = vld [vmem:[%s2157_s17 + $0x5c] sm:$0x1]  ;;  %v2104_v26 = vld [vmem:[%s3259_s1 + $0x10] ss:$0 sps:$4 sm:$0x33]   ;;  %v724_v0 = vrot.slane %v722_v58, 4 }
  0x66   : > { %1044 = vrot.lane.b32.xlu1 %v2396_v11, %s2116_s19  ;;  %v697_v11 = vsel %vm2234_vm6, %v692_v42, %v696_v4  ;;  %v2686_v4 = vld [vmem:[%s2157_s17 + $0x54] sm:$0xf]  ;;  %v2689_v42 = vld [vmem:[%s2157_s17 + $0x58] sm:$0xf]  ;;  %v2705_v38 = vcombine.low %v505_v18, %v515_v8  ;;  %v711_v18 = vrot.slane %v709_v45, 4  ;;  %v728_v36 = vshll.u32 %v2712_v24, 16  ;;  %2069 = vmatprep.subr.msk.bf16.mxu0 %vm1651_vm7, %v2104_v26 }
  0x67   : > { %v2693_v29 = vcombine.low %v697_v11, %v707_v9  ;;  %v712_v11 = vshll.u32 %v2666_v59, 16  ;;  %v517_v34 = vshrl.u32 %v2686_v4, 16  ;;  %v520_v7 = vshll.u32 %v2686_v4, 16  ;;  %2070 = vmatprep.subr.msk.bf16.mxu1 %vm1651_vm7, %v2104_v26 }
  0x68   : > { %v530_v32 = vshrl.u32 %v2689_v42, 16  ;;  %v718_v9 = vshll.u32 %v2674_v39, 16  ;;  %v730_v54 = vrot.slane %v728_v36, 5  ;;  %v536_v14 = vshll.u32 %v201_v60, 16 }
  0x69   : > { %786 = vrot.lane.b32.xlu0 %v2526_v57, %s2117_s20  ;;  %v519_v25 = vrot.slane %v517_v34, 4  ;;  %v1653_v34 = vsel %vm1651_vm7, %v2104_v26, 0 }
  0x6a   : > { %1046 = vrot.lane.b32.xlu1 %v2544_v20, %s2116_s19  ;;  %v532_v8 = vrot.slane %v530_v32, 4  ;;  %v720_v45 = vrot.slane %v718_v9, 5  ;;  %2030 = vmatpush3.bf16.msra.mxu0 %v1653_v34 }
  0x6b   : > { %2068 = vmatpush3.bf16.msra.mxu1 %v1653_v34  ;;  %v3286_v34 = vshrl.u32 %v2463_v2, 16 }
  0x6c   : > { %v725_v10 = vor.u32 %v724_v0, %v720_v45  ;;  %v918_v0 = vrot.slane %v201_v60, 5 }
  0x6d   : > { %1028 = vrot.lane.b32.xlu0 %v2433_v35, %s2116_s19  ;;  %v912_v35 = vsel %vm2189_vm5, %v910_v21, %v911_v47  ;;  %v714_v47 = vrot.slane %v712_v11, 5  ;;  %v526_v21 = vshll.u32 %v2689_v42, 16  ;;  %v1958_v11 = vrot.slane %v2666_v59, 9 }
  0x6e   : > { %1114 = vrot.lane.b32.xlu1 %v2354_v50, %s2115_s18  ;;  %v2714_v27 = vcombine.low %v909_v56, %v912_v35  ;;  %v2721_v50 = vcombine.low %v2686_v4, %v2689_v42  ;;  %v522_v56 = vrot.slane %v520_v7, 5  ;;  %v726_v9 = vrot.slane %v725_v10, 4 }
  0x6f   : > { %v715_v35 = vor.u32 %v714_v47, %v711_v18  ;;  %v528_v1 = vrot.slane %v526_v21, 5  ;;  %v971_v18 = vrot.slane %v2674_v39, 5  ;;  %v974_v47 = vrot.slane %v2712_v24, 5 }
  0x70   : > { %3283 = vst [vmem:[#allocation9_spill] sm:$0xff] %v2721_v50  ;;  %336 = vst.msk [vmem:[#allocation2 + $0x38] sm:$0xff] %vm328_vm0, %v2721_v50  ;;  %v523_v41 = vor.u32 %v522_v56, %v519_v25  ;;  %v538_v50 = vrot.slane %v536_v14, 5  ;;  %v915_v14 = vrot.slane %v2689_v42, 5  ;;  %v731_v10 = vsel %vm2234_vm6, %v726_v9, %v730_v54 }
  0x71   : > { %1030 = vrot.lane.b32.xlu0 %v2550_v62, %s2116_s19  ;;  %v716_v58 = vrot.slane %v715_v35, 4  ;;  %v533_v32 = vor.u32 %v532_v8, %v528_v1  ;;  %v972_v26 = vsel %vm2189_vm5, %v1958_v11, %v971_v18  ;;  %v973_v39 = vrot.slane %v971_v18, 4 }
  0x72   : > { %1116 = vrot.lane.b32.xlu1 %v2423_v6, %s2115_s18  ;;  %v524_v7 = vrot.slane %v523_v41, 4  ;;  %v670_v54 = vshll.u32 %v2471_v13, 16  ;;  %v478_v18 = vshll.u32 %v2490_v28, 16  ;;  %vm1602_vm0 = vcmask 293888  }
  0x73   : > { %v721_v59 = vsel %vm2234_vm6, %v716_v58, %v720_v45  ;;  %v534_v41 = vrot.slane %v533_v32, 4  ;;  %v975_v25 = vsel %vm2189_vm5, %v973_v39, %v974_v47  ;;  %v3285_v45 = vrot.slane %v2429_v31, 5 }
  0x74   : > { %v2767_v42 = vcombine.low %v721_v59, %v731_v10  ;;  %v2776_v21 = vcombine.low %v972_v26, %v975_v25  ;;  %v897_v58 = vrot.slane %v2514_v44, 5  ;;  %v482_v32 = vshrl.u32 %v2490_v28, 16 }
  0x75   : > { %1098 = vrot.lane.b32.xlu0 %v2379_v61, %s2115_s18  ;;  %v1950_v61 = vrot.slane %v2686_v4, 9  ;;  %v917_v4 = vrot.slane %v915_v14, 4  ;;  %v539_v36 = vsel %vm2234_vm6, %v534_v41, %v538_v50  ;;  %v3284_v50 = vsel %vm2234_vm6, %v2564_v40, %v2546_v37 }
  0x76   : > { %1206 = vrot.lane.b32.xlu1 %v2475_v17, %s2118_s21  ;;  %v529_v17 = vsel %vm2234_vm6, %v524_v7, %v528_v1  ;;  %v674_v1 = vshrl.u32 %v2471_v13, 16  ;;  %v2789_v35 = vcombine.low %v3284_v50, %v467_v63  ;;  %v1947_v13 = vrot.slane %v2426_v33, 9 }
  0x77   : > { %v916_v24 = vsel %vm2189_vm5, %v1950_v61, %v915_v14  ;;  %v2774_v56 = vcombine.low %v529_v17, %v539_v36  ;;  %v919_v60 = vsel %vm2189_vm5, %v917_v4, %v918_v0  ;;  %v896_v11 = vrot.slane %v3285_v45, 4 }
  0x78   : > { %v2780_v8 = vcombine.low %v916_v24, %v919_v60  ;;  %v663_v7 = vrot.slane %v3286_v34, 4  ;;  %v3287_v37 = vshll.u32 %v2463_v2, 16  ;;  %v672_v63 = vrot.slane %v670_v54, 5 }
  0x79   : > { %1100 = vrot.lane.b32.xlu0 %v2446_v46, %s2115_s18  ;;  %v676_v33 = vrot.slane %v674_v1, 4  ;;  %v3288_v44 = vmov %v3285_v45  ;;  %v472_v2 = vshll.u32 %v2482_v48, 16  ;;  %v680_v31 = vshll.u32 %v2559_v30, 16 }
  0x7a   : > { %1208 = vrot.lane.b32.xlu1 %v2615_v23, %s2118_s21  ;;  %v666_v40 = vrot.slane %v3287_v37, 5  ;;  %v480_v17 = vrot.slane %v478_v18, 5  ;;  %v488_v10 = vshll.u32 %v2574_v22, 16 }
  0x7b   : > { %v677_v59 = vor.u32 %v676_v33, %v672_v63  ;;  %v474_v14 = vrot.slane %v472_v2, 5  ;;  %v682_v39 = vrot.slane %v680_v31, 5 }
  0x7c   : > { %v667_v47 = vor.u32 %v666_v40, %v663_v7  ;;  %v490_v25 = vrot.slane %v488_v10, 5 }
  0x7d   : > { %1190 = vrot.lane.b32.xlu0 %v2526_v57, %s2118_s21  ;;  %v2799_v57 = vcombine.low %v2590_v52, %v2645_v53  ;;  %v898_v52 = vsel %vm2189_vm5, %v896_v11, %v897_v58  ;;  %v469_v53 = vshrl.u32 %v2482_v48, 16  ;;  %v484_v48 = vrot.slane %v482_v32, 4 }
  0x7e   : > { %1282 = vrot.lane.b32.xlu1 %v2544_v20, %s2119_s22  ;;  %v895_v20 = vsel %vm2189_vm5, %v1947_v13, %v3288_v44  ;;  %v668_v41 = vrot.slane %v667_v47, 4  ;;  %v678_v26 = vrot.slane %v677_v59, 4 }
  0x7f   : > { %v2822_v9 = vcombine.low %v895_v20, %v898_v52  ;;  %v471_v61 = vrot.slane %v469_v53, 4  ;;  %v485_v30 = vor.u32 %v484_v48, %v480_v17 }
  0x80   : > { %v683_v24 = vsel %vm2234_vm6, %v678_v26, %v682_v39 }
  0x81   : > { %1192 = vrot.lane.b32.xlu0 %v2789_v35, %s2118_s21  ;;  %v486_v36 = vrot.slane %v485_v30, 4 }
  0x82   : > { %1284 = vrot.lane.b32.xlu1 %v2799_v57, %s2119_s22 }
  0x85   : > { %1266 = vrot.lane.b32.xlu0 %v2550_v62, %s2119_s22  ;;  %v475_v62 = vor.u32 %v474_v14, %v471_v61  ;;  %v3289_v61 = vld [vmem:[#allocation9_spill] sm:$0xff] }
  0x86   : > { %1352 = vrot.lane.b32.xlu1 %v2423_v6, %s2120_s23  ;;  %v673_v6 = vsel %vm2234_vm6, %v668_v41, %v672_v63 }
  0x87   : > { %v2839_v0 = vcombine.low %v673_v6, %v683_v24  ;;  %v476_v1 = vrot.slane %v475_v62, 4  ;;  %v2974_v6 = vld [vmem:[%s2157_s17 + $0xc4] sm:$0xf] }
  0x88   : > { %v1111_v28 = vpop.permute.xlu1 %1110 }
  0x89   : > { %1268 = vrot.lane.b32.xlu0 %v2822_v9, %s2119_s22  ;;  %v481_v22 = vsel %vm2234_vm6, %v476_v1, %v480_v17  ;;  %v1173_v1 = vshrl.u32 %v2974_v6, 16 }
  0x8a   : > { %1354 = vrot.lane.b32.xlu1 %v2487_v5, %s2120_s23  ;;  %v1095_v4 = vpop.permute.xlu0 %1094 }
  0x8d   : > { %1336 = vrot.lane.b32.xlu0 %v2446_v46, %s2120_s23  ;;  %v491_v46 = vsel %vm2234_vm6, %v486_v36, %v490_v25  ;;  %v1169_v36 = vshll.u32 %v2974_v6, 16 }
  0x8e   : > { %1444 = vrot.lane.b32.xlu1 %v2615_v23, %s2121_s24  ;;  %v2851_v13 = vcombine.low %v481_v22, %v491_v46 }
  0x8f   : > { %v1171_v46 = vrot.slane %v1169_v36, 5 }
  0x90   : > { %v1041_v54 = vpop.permute.xlu1 %1040 }
  0x91   : > { %1338 = vrot.lane.b32.xlu0 %v2518_v43, %s2120_s23 }
  0x92   : > { %1446 = vrot.lane.b32.xlu1 %v2839_v0, %s2121_s24  ;;  %v1025_v60 = vpop.permute.xlu0 %1024 }
  0x94   : > { %v1043_v50 = vpop.permute.xlu1 %1042 }
  0x95   : > { %1428 = vrot.lane.b32.xlu0 %v2789_v35, %s2121_s24 }
  0x96   : > { %1520 = vrot.lane.b32.xlu1 %v2799_v57, %s2122_s27  ;;  %v1027_v45 = vpop.permute.xlu0 %1026 }
  0x99   : > { %1430 = vrot.lane.b32.xlu0 %v2851_v13, %s2121_s24  ;;  %v783_v11 = vpop.permute.xlu1 %782 }
  0x9a   : > { %804 = vrot.lane.b32.xlu1 %v2615_v23, %s2117_s20  ;;  %830 = vst.msk [vmem:[#allocation2 + $0x8] sm:$0xff] %vm828_vm8, %v783_v11 }
  0x9b   : > { %1074 = vst.msk [vmem:[#allocation2 + $0x8] sm:$0xff] %vm1072_vm9, %v1027_v45 }
  0x9d   : > { %1504 = vrot.lane.b32.xlu0 %v2822_v9, %s2122_s27 }
  0x9e   : > { %v781_v58 = vpop.permute.xlu0 %780  ;;  %1522 = vrot.lane.b32.xlu1 %v2619_v19, %s2122_s27 }
  0x9f   : > { %829 = vst.msk [vmem:[#allocation2] sm:$0xff] %vm828_vm8, %v781_v58 }
  0xa0   : > { %1073 = vst.msk [vmem:[#allocation2] sm:$0xff] %vm1072_vm9, %v1025_v60  ;;  %v799_v34 = vpop.permute.xlu1 %798  ;;  %v1175_v60 = vrot.slane %v1173_v1, 4 }
  0xa1   : > { %788 = vrot.lane.b32.xlu0 %v2789_v35, %s2117_s20  ;;  %838 = vst.msk [vmem:[#allocation2 + $0x48] sm:$0xff] %vm828_vm8, %v799_v34 }
  0xa2   : > { %1143 = vst.msk [vmem:[#allocation2] sm:$0xff] %vm1142_vm10, %v1095_v4  ;;  %806 = vrot.lane.b32.xlu1 %v2839_v0, %s2117_s20 }
  0xa3   : > { %1082 = vst.msk [vmem:[#allocation2 + $0x48] sm:$0xff] %vm1072_vm9, %v1043_v50 }
  0xa4   : > { %v1113_v23 = vpop.permute.xlu1 %1112 }
  0xa5   : > { %1506 = vrot.lane.b32.xlu0 %v2625_v55, %s2122_s27  ;;  %1152 = vst.msk [vmem:[#allocation2 + $0x48] sm:$0xff] %vm1142_vm10, %v1113_v23 }
  0xa6   : > { %1048 = vrot.lane.b32.xlu1 %v2799_v57, %s2116_s19 }
  0xa7   : > { %v797_v7 = vpop.permute.xlu0 %796 }
  0xa8   : > { %837 = vst.msk [vmem:[#allocation2 + $0x40] sm:$0xff] %vm828_vm8, %v797_v7  ;;  %v1203_v35 = vpop.permute.xlu1 %1202 }
  0xa9   : > { %1081 = vst.msk [vmem:[#allocation2 + $0x40] sm:$0xff] %vm1072_vm9, %v1041_v54  ;;  %790 = vrot.lane.b32.xlu0 %v2851_v13, %s2117_s20 }
  0xaa   : > { %1151 = vst.msk [vmem:[#allocation2 + $0x40] sm:$0xff] %vm1142_vm10, %v1111_v28  ;;  %1050 = vrot.lane.b32.xlu1 %v2619_v19, %s2116_s19 }
  0xab   : > { %v1097_v37 = vpop.permute.xlu0 %1096  ;;  %1243 = vst.msk [vmem:[#allocation2 + $0x40] sm:$0xff] %vm1234_vm11, %v1203_v35 }
  0xac   : > { %1144 = vst.msk [vmem:[#allocation2 + $0x8] sm:$0xff] %vm1142_vm10, %v1097_v37  ;;  %v1205_v57 = vpop.permute.xlu1 %1204 }
  0xad   : > { %1032 = vrot.lane.b32.xlu0 %v2822_v9, %s2116_s19  ;;  %1244 = vst.msk [vmem:[#allocation2 + $0x48] sm:$0xff] %vm1234_vm11, %v1205_v57 }
  0xae   : > { %1118 = vrot.lane.b32.xlu1 %v2487_v5, %s2115_s18 }
  0xaf   : > { %v1187_v40 = vpop.permute.xlu0 %1186 }
  0xb0   : > { %1235 = vst.msk [vmem:[#allocation2] sm:$0xff] %vm1234_vm11, %v1187_v40  ;;  %v1279_v63 = vpop.permute.xlu1 %1278 }
  0xb1   : > { %1034 = vrot.lane.b32.xlu0 %v2625_v55, %s2116_s19  ;;  %1319 = vst.msk [vmem:[#allocation2 + $0x40] sm:$0xff] %vm1310_vm12, %v1279_v63 }
  0xb2   : > { %1120 = vrot.lane.b32.xlu1 %v2630_v12, %s2115_s18 }
  0xb3   : > { %v1189_v33 = vpop.permute.xlu0 %1188 }
  0xb4   : > { %1236 = vst.msk [vmem:[#allocation2 + $0x8] sm:$0xff] %vm1234_vm11, %v1189_v33  ;;  %v1281_v44 = vpop.permute.xlu1 %1280 }
  0xb5   : > { %1102 = vrot.lane.b32.xlu0 %v2518_v43, %s2115_s18  ;;  %1320 = vst.msk [vmem:[#allocation2 + $0x48] sm:$0xff] %vm1310_vm12, %v1281_v44 }
  0xb6   : > { %1210 = vrot.lane.b32.xlu1 %v2839_v0, %s2118_s21 }
  0xb7   : > { %v1263_v5 = vpop.permute.xlu0 %1262 }
  0xb8   : > { %1311 = vst.msk [vmem:[#allocation2] sm:$0xff] %vm1310_vm12, %v1263_v5  ;;  %v1349_v20 = vpop.permute.xlu1 %1348 }
  0xb9   : > { %1104 = vrot.lane.b32.xlu0 %v2639_v49, %s2115_s18  ;;  %1389 = vst.msk [vmem:[#allocation2 + $0x40] sm:$0xff] %vm1380_vm13, %v1349_v20 }
  0xba   : > { %1212 = vrot.lane.b32.xlu1 %v2693_v29, %s2118_s21 }
  0xbb   : > { %v1265_v52 = vpop.permute.xlu0 %1264 }
  0xbc   : > { %1312 = vst.msk [vmem:[#allocation2 + $0x8] sm:$0xff] %vm1310_vm12, %v1265_v52  ;;  %v1351_v43 = vpop.permute.xlu1 %1350 }
  0xbd   : > { %1194 = vrot.lane.b32.xlu0 %v2851_v13, %s2118_s21  ;;  %1390 = vst.msk [vmem:[#allocation2 + $0x48] sm:$0xff] %vm1380_vm13, %v1351_v43  ;;  %v228_v13 = vld [vmem:[%s2157_s17 + $0xc8] sm:$0x1] }
  0xbe   : > { %1286 = vrot.lane.b32.xlu1 %v2619_v19, %s2119_s22  ;;  %v1179_v58 = vshll.u32 %v228_v13, 16  ;;  %v1257_v43 = vrot.slane %v228_v13, 5 }
  0xbf   : > { %v1333_v53 = vpop.permute.xlu0 %1332 }
  0xc0   : > { %1381 = vst.msk [vmem:[#allocation2] sm:$0xff] %vm1380_vm13, %v1333_v53  ;;  %v1441_v2 = vpop.permute.xlu1 %1440  ;;  %v1181_v57 = vrot.slane %v1179_v58, 5  ;;  %v3293_v58 = vld [vmem:[#allocation3_spill] sm:$0xff] }
  0xc1   : > { %1196 = vrot.lane.b32.xlu0 %v2705_v38, %s2118_s21  ;;  %1481 = vst.msk [vmem:[#allocation2 + $0x40] sm:$0xff] %vm1472_vm14, %v1441_v2 }
  0xc2   : > { %1288 = vrot.lane.b32.xlu1 %v2697_v15, %s2119_s22 }
  0xc3   : > { %v1335_v32 = vpop.permute.xlu0 %1334 }
  0xc4   : > { %1382 = vst.msk [vmem:[#allocation2 + $0x8] sm:$0xff] %vm1380_vm13, %v1335_v32  ;;  %v1443_v18 = vpop.permute.xlu1 %1442  ;;  %v3030_v32 = vld [vmem:[%s2157_s17 + $0xcc] sm:$0xf] }
  0xc5   : > { %1270 = vrot.lane.b32.xlu0 %v2625_v55, %s2119_s22  ;;  %1482 = vst.msk [vmem:[#allocation2 + $0x48] sm:$0xff] %vm1472_vm14, %v1443_v18  ;;  %v3033_v18 = vld [vmem:[%s2157_s17 + $0xd0] sm:$0xf]  ;;  %v1981_v13 = vrot.slane %v3030_v32, 9 }
  0xc6   : > { %1356 = vrot.lane.b32.xlu1 %v2630_v12, %s2120_s23 }
  0xc7   : > { %v1425_v19 = vpop.permute.xlu0 %1424 }
  0xc8   : > { %1473 = vst.msk [vmem:[#allocation2] sm:$0xff] %vm1472_vm14, %v1425_v19  ;;  %v1517_v47 = vpop.permute.xlu1 %1516  ;;  %v3290_v19 = vld [vmem:[#allocation8_spill] sm:$0xff] }
  0xc9   : > { %1272 = vrot.lane.b32.xlu0 %v2714_v27, %s2119_s22  ;;  %1557 = vst.msk [vmem:[#allocation2 + $0x40] sm:$0xff] %vm1548_vm15, %v1517_v47 }
  0xca   : > { %1358 = vrot.lane.b32.xlu1 %v2701_v3, %s2120_s23 }
  0xcb   : > { %v1427_v59 = vpop.permute.xlu0 %1426 }
  0xcc   : > { %1474 = vst.msk [vmem:[#allocation2 + $0x8] sm:$0xff] %vm1472_vm14, %v1427_v59  ;;  %v801_v55 = vpop.permute.xlu1 %800 }
  0xcd   : > { %1340 = vrot.lane.b32.xlu0 %v2639_v49, %s2120_s23  ;;  %839 = vst.msk [vmem:[#allocation2 + $0x50] sm:$0xff] %vm828_vm8, %v801_v55  ;;  %v1398_v55 = vshrl.u32 %v3030_v32, 16 }
  0xce   : > { %1448 = vrot.lane.b32.xlu1 %v2693_v29, %s2121_s24 }
  0xcf   : > { %v1501_v12 = vpop.permute.xlu0 %1500 }
  0xd0   : > { %1549 = vst.msk [vmem:[#allocation2] sm:$0xff] %vm1548_vm15, %v1501_v12  ;;  %v1519_v31 = vpop.permute.xlu1 %1518  ;;  %v1573_v9 = vld [vmem:[#allocation2 + $0x40] sm:$0xff]  ;;  %v1401_v12 = vshll.u32 %v3030_v32, 16 }
  0xd1   : > { %1342 = vrot.lane.b32.xlu0 %v3289_v61, %s2120_s23  ;;  %1558 = vst.msk [vmem:[#allocation2 + $0x48] sm:$0xff] %vm1548_vm15, %v1519_v31  ;;  %2047 = vmatprep.mubr.msk.bf16.mxu1 %vm1602_vm0, %v1573_v9  ;;  %v1411_v31 = vshrl.u32 %v3033_v18, 16  ;;  %v1407_v9 = vshll.u32 %v3033_v18, 16 }
  0xd2   : > { %1450 = vrot.lane.b32.xlu1 %v2767_v42, %s2121_s24 }
  0xd3   : > { %v785_v49 = vpop.permute.xlu0 %784 }
  0xd4   : > { %831 = vst.msk [vmem:[#allocation2 + $0x10] sm:$0xff] %vm828_vm8, %v785_v49  ;;  %v803_v14 = vpop.permute.xlu1 %802 }
  0xd5   : > { %1432 = vrot.lane.b32.xlu0 %v2705_v38, %s2121_s24  ;;  %840 = vst.msk [vmem:[#allocation2 + $0x58] sm:$0xff] %vm828_vm8, %v803_v14 }
  0xd6   : > { %1524 = vrot.lane.b32.xlu1 %v2697_v15, %s2122_s27 }
  0xd7   : > { %v1503_v17 = vpop.permute.xlu0 %1502  ;;  %v1565_v48 = vld [vmem:[#allocation2] sm:$0xff] }
  0xd8   : > { %1550 = vst.msk [vmem:[#allocation2 + $0x8] sm:$0xff] %vm1548_vm15, %v1503_v17  ;;  %2031 = vmatprep.mubr.msk.bf16.mxu0 %vm1602_vm0, %v1565_v48  ;;  %v1045_v41 = vpop.permute.xlu1 %1044  ;;  %v1574_v26 = vld [vmem:[#allocation2 + $0x48] sm:$0xff]  ;;  %v1400_v17 = vrot.slane %v1398_v55, 4  ;;  %v1403_v48 = vrot.slane %v1401_v12, 5 }
  0xd9   : > { %1434 = vrot.lane.b32.xlu0 %v2774_v56, %s2121_s24  ;;  %1083 = vst.msk [vmem:[#allocation2 + $0x50] sm:$0xff] %vm1072_vm9, %v1045_v41  ;;  %2048 = vmatmul.mubr.msk.bf16.vlgmr.msra.gmra.mrb[0].mxu1 %vm1602_vm0, %v1574_v26  ;;  %v1409_v41 = vrot.slane %v1407_v9, 5  ;;  %v1413_v26 = vrot.slane %v1411_v31, 4 }
  0xda   : > { %808 = vrot.lane.b32.xlu1 %v2693_v29, %s2117_s20  ;;  %v2971_v29 = vld [vmem:[%s2157_s17 + $0xc0] sm:$0xf] }
  0xdb   : > { %v787_v39 = vpop.permute.xlu0 %786  ;;  %v1160_v4 = vshrl.u32 %v2971_v29, 16  ;;  %v1163_v0 = vshll.u32 %v2971_v29, 16  ;;  %v3006_v23 = vcombine.low %v2971_v29, %v2974_v6  ;;  %v1977_v20 = vrot.slane %v2971_v29, 9 }
  0xdc   : > { %832 = vst.msk [vmem:[#allocation2 + $0x18] sm:$0xff] %vm828_vm8, %v787_v39  ;;  %v1047_v28 = vpop.permute.xlu1 %1046 }
  0xdd   : > { %1508 = vrot.lane.b32.xlu0 %v2714_v27, %s2122_s27  ;;  %1084 = vst.msk [vmem:[#allocation2 + $0x58] sm:$0xff] %vm1072_vm9, %v1047_v28  ;;  %v1162_v54 = vrot.slane %v1160_v4, 4  ;;  %v1165_v22 = vrot.slane %v1163_v0, 5  ;;  %v231_v28 = vld [vmem:[%s2157_s17 + $0xd4] sm:$0x1] }
  0xde   : > { %1526 = vrot.lane.b32.xlu1 %v2776_v21, %s2122_s27  ;;  %v1495_v51 = vrot.slane %v231_v28, 5 }
  0xdf   : > { %v1029_v62 = vpop.permute.xlu0 %1028  ;;  %v1566_v30 = vld [vmem:[#allocation2 + $0x8] sm:$0xff]  ;;  %v1166_v11 = vor.u32 %v1165_v22, %v1162_v54  ;;  %v1492_v22 = vrot.slane %v3033_v18, 5 }
  0xe0   : > { %1075 = vst.msk [vmem:[#allocation2 + $0x10] sm:$0xff] %vm1072_vm9, %v1029_v62  ;;  %2032 = vmatmul.mubr.msk.bf16.vlgmr.msra.gmra.mrb[0].mxu0 %vm1602_vm0, %v1566_v30  ;;  %v1115_v10 = vpop.permute.xlu1 %1114  ;;  %v3291_v62 = vld [vmem:[#allocation7_spill] sm:$0xff]  ;;  %v1404_v30 = vor.u32 %v1403_v48, %v1400_v17 }
  0xe1   : > { %792 = vrot.lane.b32.xlu0 %v2705_v38, %s2117_s20  ;;  %1153 = vst.msk [vmem:[#allocation2 + $0x50] sm:$0xff] %vm1142_vm10, %v1115_v10  ;;  %v1167_v35 = vrot.slane %v1166_v11, 4  ;;  %v1417_v10 = vshll.u32 %v231_v28, 16 }
  0xe2   : > { %810 = vrot.lane.b32.xlu1 %v2767_v42, %s2117_s20  ;;  %v1405_v4 = vrot.slane %v1404_v30, 4 }
  0xe3   : > { %v1031_v24 = vpop.permute.xlu0 %1030  ;;  %v1172_v63 = vsel %vm2234_vm6, %v1167_v35, %v1171_v46  ;;  %v1419_v1 = vrot.slane %v1417_v10, 5 }
  0xe4   : > { %1076 = vst.msk [vmem:[#allocation2 + $0x18] sm:$0xff] %vm1072_vm9, %v1031_v24  ;;  %v1117_v25 = vpop.permute.xlu1 %1116 }
  0xe5   : > { %1510 = vrot.lane.b32.xlu0 %v2780_v8, %s2122_s27  ;;  %1154 = vst.msk [vmem:[#allocation2 + $0x58] sm:$0xff] %vm1142_vm10, %v1117_v25  ;;  %v3292_v25 = vld [vmem:[#allocation4_spill] sm:$0xff] }
  0xe6   : > { %1052 = vrot.lane.b32.xlu1 %v2697_v15, %s2116_s19  ;;  %v1176_v15 = vor.u32 %v1175_v60, %v1171_v46 }
  0xe7   : > { %v1099_v38 = vpop.permute.xlu0 %1098 }
  0xe8   : > { %1145 = vst.msk [vmem:[#allocation2 + $0x10] sm:$0xff] %vm1142_vm10, %v1099_v38  ;;  %v1207_v50 = vpop.permute.xlu1 %1206  ;;  %v1177_v37 = vrot.slane %v1176_v15, 4  ;;  %v1410_v38 = vsel %vm2234_vm6, %v1405_v4, %v1409_v41 }
  0xe9   : > { %794 = vrot.lane.b32.xlu0 %v2774_v56, %s2117_s20  ;;  %1245 = vst.msk [vmem:[#allocation2 + $0x50] sm:$0xff] %vm1234_vm11, %v1207_v50 }
  0xea   : > { %1054 = vrot.lane.b32.xlu1 %v2776_v21, %s2116_s19  ;;  %v1182_v33 = vsel %vm2234_vm6, %v1177_v37, %v1181_v57 }
  0xeb   : > { %v1101_v45 = vpop.permute.xlu0 %1100  ;;  %v3025_v5 = vcombine.low %v1172_v63, %v1182_v33 }
  0xec   : > { %1146 = vst.msk [vmem:[#allocation2 + $0x18] sm:$0xff] %vm1142_vm10, %v1101_v45  ;;  %v1209_v34 = vpop.permute.xlu1 %1208  ;;  %v1494_v45 = vrot.slane %v1492_v22, 4 }
  0xed   : > { %1036 = vrot.lane.b32.xlu0 %v2714_v27, %s2116_s19  ;;  %1246 = vst.msk [vmem:[#allocation2 + $0x58] sm:$0xff] %vm1234_vm11, %v1209_v34 }
  0xee   : > { %1122 = vrot.lane.b32.xlu1 %v2701_v3, %s2115_s18  ;;  %v1254_v3 = vrot.slane %v2974_v6, 5  ;;  %v1979_v6 = vcombine.low %v3030_v32, %v3033_v18 }
  0xef   : > { %v1191_v7 = vpop.permute.xlu0 %1190 }
  0xf0   : > { %1237 = vst.msk [vmem:[#allocation2 + $0x10] sm:$0xff] %vm1234_vm11, %v1191_v7  ;;  %v1283_v40 = vpop.permute.xlu1 %1282  ;;  %v1256_v52 = vrot.slane %v1254_v3, 4  ;;  %v1496_v7 = vsel %vm2189_vm5, %v1494_v45, %v1495_v51 }
  0xf1   : > { %1038 = vrot.lane.b32.xlu0 %v2780_v8, %s2116_s19  ;;  %1321 = vst.msk [vmem:[#allocation2 + $0x50] sm:$0xff] %vm1310_vm12, %v1283_v40 }
  0xf2   : > { %1124 = vrot.lane.b32.xlu1 %v3006_v23, %s2115_s18  ;;  %v1258_v47 = vsel %vm2189_vm5, %v1256_v52, %v1257_v43  ;;  %v3295_v52 = vld [vmem:[#allocation5_spill] sm:$0xff] }
  0xf3   : > { %v1193_v27 = vpop.permute.xlu0 %1192 }
  0xf4   : > { %1238 = vst.msk [vmem:[#allocation2 + $0x18] sm:$0xff] %vm1234_vm11, %v1193_v27  ;;  %v1285_v44 = vpop.permute.xlu1 %1284  ;;  %v3294_v27 = vld [vmem:[#allocation6_spill] sm:$0xff] }
  0xf5   : > { %1106 = vrot.lane.b32.xlu0 %v3289_v61, %s2115_s18  ;;  %1322 = vst.msk [vmem:[#allocation2 + $0x58] sm:$0xff] %vm1310_vm12, %v1285_v44 }
  0xf6   : > { %1214 = vrot.lane.b32.xlu1 %v2767_v42, %s2118_s21  ;;  %v1255_v42 = vsel %vm2189_vm5, %v1977_v20, %v1254_v3 }
  0xf7   : > { %v1267_v53 = vpop.permute.xlu0 %1266  ;;  %v1978_v49 = vcombine.low %v1255_v42, %v1258_v47 }
  0xf8   : > { %1313 = vst.msk [vmem:[#allocation2 + $0x10] sm:$0xff] %vm1310_vm12, %v1267_v53  ;;  %v1353_v2 = vpop.permute.xlu1 %1352 }
  0xf9   : > { %1108 = vrot.lane.b32.xlu0 %v3290_v19, %s2115_s18  ;;  %1391 = vst.msk [vmem:[#allocation2 + $0x50] sm:$0xff] %vm1380_vm13, %v1353_v2 }
  0xfa   : > { %1216 = vrot.lane.b32.xlu1 %v3025_v5, %s2118_s21 }
  0xfb   : > { %v1269_v59 = vpop.permute.xlu0 %1268 }
  0xfc   : > { %1314 = vst.msk [vmem:[#allocation2 + $0x18] sm:$0xff] %vm1310_vm12, %v1269_v59  ;;  %v1355_v61 = vpop.permute.xlu1 %1354 }
  0xfd   : > { %1198 = vrot.lane.b32.xlu0 %v2774_v56, %s2118_s21  ;;  %1392 = vst.msk [vmem:[#allocation2 + $0x58] sm:$0xff] %vm1380_vm13, %v1355_v61 }
  0xfe   : > { %1290 = vrot.lane.b32.xlu1 %v2776_v21, %s2119_s22  ;;  %v1414_v21 = vor.u32 %v1413_v26, %v1409_v41 }
  0xff   : > { %v1337_v14 = vpop.permute.xlu0 %1336 }
 0x100   : > { %1383 = vst.msk [vmem:[#allocation2 + $0x10] sm:$0xff] %vm1380_vm13, %v1337_v14  ;;  %v1445_v39 = vpop.permute.xlu1 %1444  ;;  %v1415_v0 = vrot.slane %v1414_v21, 4 }
 0x101   : > { %1200 = vrot.lane.b32.xlu0 %v3291_v62, %s2118_s21  ;;  %1483 = vst.msk [vmem:[#allocation2 + $0x50] sm:$0xff] %vm1472_vm14, %v1445_v39 }
 0x102   : > { %1292 = vrot.lane.b32.xlu1 %v1978_v49, %s2119_s22  ;;  %v1420_v54 = vsel %vm2234_vm6, %v1415_v0, %v1419_v1 }
 0x103   : > { %v1339_v56 = vpop.permute.xlu0 %1338  ;;  %v1980_v60 = vcombine.low %v1410_v38, %v1420_v54 }
 0x104   : > { %1384 = vst.msk [vmem:[#allocation2 + $0x18] sm:$0xff] %vm1380_vm13, %v1339_v56  ;;  %v1447_v29 = vpop.permute.xlu1 %1446 }
 0x105   : > { %1274 = vrot.lane.b32.xlu0 %v2780_v8, %s2119_s22  ;;  %1484 = vst.msk [vmem:[#allocation2 + $0x58] sm:$0xff] %vm1472_vm14, %v1447_v29 }
 0x106   : > { %1360 = vrot.lane.b32.xlu1 %v3006_v23, %s2120_s23  ;;  %v1493_v23 = vsel %vm2189_vm5, %v1981_v13, %v1492_v22 }
 0x107   : > { %v1429_v24 = vpop.permute.xlu0 %1428  ;;  %v1982_v37 = vcombine.low %v1493_v23, %v1496_v7 }
 0x108   : > { %1475 = vst.msk [vmem:[#allocation2 + $0x10] sm:$0xff] %vm1472_vm14, %v1429_v24  ;;  %v1521_v36 = vpop.permute.xlu1 %1520 }
 0x109   : > { %1276 = vrot.lane.b32.xlu0 %v3292_v25, %s2119_s22  ;;  %1559 = vst.msk [vmem:[#allocation2 + $0x50] sm:$0xff] %vm1548_vm15, %v1521_v36 }
 0x10a   : > { %1362 = vrot.lane.b32.xlu1 %v1979_v6, %s2120_s23 }
 0x10b   : > { %v1431_v8 = vpop.permute.xlu0 %1430 }
 0x10c   : > { %1476 = vst.msk [vmem:[#allocation2 + $0x18] sm:$0xff] %vm1472_vm14, %v1431_v8  ;;  %v805_v46 = vpop.permute.xlu1 %804 }
 0x10d   : > { %1344 = vrot.lane.b32.xlu0 %v3290_v19, %s2120_s23  ;;  %841 = vst.msk [vmem:[#allocation2 + $0x60] sm:$0xff] %vm828_vm8, %v805_v46 }
 0x10e   : > { %1452 = vrot.lane.b32.xlu1 %v3025_v5, %s2121_s24 }
 0x10f   : > { %v1505_v50 = vpop.permute.xlu0 %1504 }
 0x110   : > { %1551 = vst.msk [vmem:[#allocation2 + $0x10] sm:$0xff] %vm1548_vm15, %v1505_v50  ;;  %v1523_v11 = vpop.permute.xlu1 %1522  ;;  %v1575_v15 = vld [vmem:[#allocation2 + $0x50] sm:$0xff] }
 0x111   : > { %1346 = vrot.lane.b32.xlu0 %v3293_v58, %s2120_s23  ;;  %1560 = vst.msk [vmem:[#allocation2 + $0x58] sm:$0xff] %vm1548_vm15, %v1523_v11  ;;  %2051 = vmatprep.mubr.msk.bf16.mxu1 %vm1602_vm0, %v1575_v15 }
 0x112   : > { %1454 = vrot.lane.b32.xlu1 %v1980_v60, %s2121_s24 }
 0x113   : > { %v789_v34 = vpop.permute.xlu0 %788 }
 0x114   : > { %833 = vst.msk [vmem:[#allocation2 + $0x20] sm:$0xff] %vm828_vm8, %v789_v34  ;;  %v807_v35 = vpop.permute.xlu1 %806 }
 0x115   : > { %1436 = vrot.lane.b32.xlu0 %v3291_v62, %s2121_s24  ;;  %842 = vst.msk [vmem:[#allocation2 + $0x68] sm:$0xff] %vm828_vm8, %v807_v35 }
 0x116   : > { %1528 = vrot.lane.b32.xlu1 %v1978_v49, %s2122_s27 }
 0x117   : > { %v1507_v57 = vpop.permute.xlu0 %1506  ;;  %v1567_v40 = vld [vmem:[#allocation2 + $0x10] sm:$0xff] }
 0x118   : > { %1552 = vst.msk [vmem:[#allocation2 + $0x18] sm:$0xff] %vm1548_vm15, %v1507_v57  ;;  %2035 = vmatprep.mubr.msk.bf16.mxu0 %vm1602_vm0, %v1567_v40  ;;  %v1049_v3 = vpop.permute.xlu1 %1048  ;;  %v1576_v16 = vld [vmem:[#allocation2 + $0x58] sm:$0xff] }
 0x119   : > { %1438 = vrot.lane.b32.xlu0 %v3294_v27, %s2121_s24  ;;  %1085 = vst.msk [vmem:[#allocation2 + $0x60] sm:$0xff] %vm1072_vm9, %v1049_v3  ;;  %2052 = vmatmul.mubr.msk.bf16.gmra.mrb[4].mxu1 %vm1602_vm0, %v1576_v16 }
 0x11a   : > { %1530 = vrot.lane.b32.xlu1 %v1982_v37, %s2122_s27 }
 0x11b   : > { %v791_v63 = vpop.permute.xlu0 %790 }
 0x11c   : > { %834 = vst.msk [vmem:[#allocation2 + $0x28] sm:$0xff] %vm828_vm8, %v791_v63  ;;  %v1051_v33 = vpop.permute.xlu1 %1050 }
 0x11d   : > { %1512 = vrot.lane.b32.xlu0 %v3292_v25, %s2122_s27  ;;  %1086 = vst.msk [vmem:[#allocation2 + $0x68] sm:$0xff] %vm1072_vm9, %v1051_v33 }
 0x11f   : > { %v1033_v44 = vpop.permute.xlu0 %1032  ;;  %v1568_v5 = vld [vmem:[#allocation2 + $0x18] sm:$0xff] }
 0x120   : > { %1077 = vst.msk [vmem:[#allocation2 + $0x20] sm:$0xff] %vm1072_vm9, %v1033_v44  ;;  %2036 = vmatmul.mubr.msk.bf16.gmra.mrb[4].mxu0 %vm1602_vm0, %v1568_v5  ;;  %v1119_v20 = vpop.permute.xlu1 %1118 }
 0x121   : > { %1514 = vrot.lane.b32.xlu0 %v3295_v52, %s2122_s27  ;;  %1155 = vst.msk [vmem:[#allocation2 + $0x60] sm:$0xff] %vm1142_vm10, %v1119_v20 }
 0x123   : > { %v1035_v43 = vpop.permute.xlu0 %1034 }
 0x124   : > { %1078 = vst.msk [vmem:[#allocation2 + $0x28] sm:$0xff] %vm1072_vm9, %v1035_v43  ;;  %v1121_v53 = vpop.permute.xlu1 %1120  ;;  %v3184_v43 = vld [vmem:[%s3260_s2] ss:$0 sm:$0xff] }
 0x125   : > { %1156 = vst.msk [vmem:[#allocation2 + $0x68] sm:$0xff] %vm1142_vm10, %v1121_v53 }
 0x127   : > { %v1103_v2 = vpop.permute.xlu0 %1102 }
 0x128   : > { %1147 = vst.msk [vmem:[#allocation2 + $0x20] sm:$0xff] %vm1142_vm10, %v1103_v2  ;;  %v1211_v32 = vpop.permute.xlu1 %1210 }
 0x129   : > { %1247 = vst.msk [vmem:[#allocation2 + $0x60] sm:$0xff] %vm1234_vm11, %v1211_v32 }
 0x12b   : > { %v1105_v18 = vpop.permute.xlu0 %1104 }
 0x12c   : > { %1148 = vst.msk [vmem:[#allocation2 + $0x28] sm:$0xff] %vm1142_vm10, %v1105_v18  ;;  %v1213_v19 = vpop.permute.xlu1 %1212 }
 0x12d   : > { %1248 = vst.msk [vmem:[#allocation2 + $0x68] sm:$0xff] %vm1234_vm11, %v1213_v19 }
 0x12f   : > { %v1195_v42 = vpop.permute.xlu0 %1194 }
 0x130   : > { %1239 = vst.msk [vmem:[#allocation2 + $0x20] sm:$0xff] %vm1234_vm11, %v1195_v42  ;;  %v1287_v47 = vpop.permute.xlu1 %1286 }
 0x131   : > { %1323 = vst.msk [vmem:[#allocation2 + $0x60] sm:$0xff] %vm1310_vm12, %v1287_v47 }
 0x133   : > { %v1197_v59 = vpop.permute.xlu0 %1196 }
 0x134   : > { %1240 = vst.msk [vmem:[#allocation2 + $0x28] sm:$0xff] %vm1234_vm11, %v1197_v59  ;;  %v1289_v55 = vpop.permute.xlu1 %1288 }
 0x135   : > { %1324 = vst.msk [vmem:[#allocation2 + $0x68] sm:$0xff] %vm1310_vm12, %v1289_v55 }
 0x137   : > { %v1271_v12 = vpop.permute.xlu0 %1270 }
 0x138   : > { %1315 = vst.msk [vmem:[#allocation2 + $0x20] sm:$0xff] %vm1310_vm12, %v1271_v12  ;;  %v1357_v31 = vpop.permute.xlu1 %1356 }
 0x139   : > { %1393 = vst.msk [vmem:[#allocation2 + $0x60] sm:$0xff] %vm1380_vm13, %v1357_v31 }
 0x13b   : > { %v1273_v9 = vpop.permute.xlu0 %1272 }
 0x13c   : > { %1316 = vst.msk [vmem:[#allocation2 + $0x28] sm:$0xff] %vm1310_vm12, %v1273_v9  ;;  %v1359_v61 = vpop.permute.xlu1 %1358 }
 0x13d   : > { %1394 = vst.msk [vmem:[#allocation2 + $0x68] sm:$0xff] %vm1380_vm13, %v1359_v61 }
 0x13f   : > { %v1341_v49 = vpop.permute.xlu0 %1340 }
 0x140   : > { %1385 = vst.msk [vmem:[#allocation2 + $0x20] sm:$0xff] %vm1380_vm13, %v1341_v49  ;;  %v1449_v14 = vpop.permute.xlu1 %1448 }
 0x141   : > { %1485 = vst.msk [vmem:[#allocation2 + $0x60] sm:$0xff] %vm1472_vm14, %v1449_v14 }
 0x143   : > { %v1343_v17 = vpop.permute.xlu0 %1342 }
 0x144   : > { %1386 = vst.msk [vmem:[#allocation2 + $0x28] sm:$0xff] %vm1380_vm13, %v1343_v17  ;;  %v1451_v48 = vpop.permute.xlu1 %1450 }
 0x145   : > { %1486 = vst.msk [vmem:[#allocation2 + $0x68] sm:$0xff] %vm1472_vm14, %v1451_v48 }
 0x147   : > { %v1433_v41 = vpop.permute.xlu0 %1432 }
 0x148   : > { %1477 = vst.msk [vmem:[#allocation2 + $0x20] sm:$0xff] %vm1472_vm14, %v1433_v41  ;;  %v1525_v26 = vpop.permute.xlu1 %1524 }
 0x149   : > { %1561 = vst.msk [vmem:[#allocation2 + $0x60] sm:$0xff] %vm1548_vm15, %v1525_v26 }
 0x14b   : > { %v1435_v39 = vpop.permute.xlu0 %1434 }
 0x14c   : > { %1478 = vst.msk [vmem:[#allocation2 + $0x28] sm:$0xff] %vm1472_vm14, %v1435_v39  ;;  %v809_v28 = vpop.permute.xlu1 %808 }
 0x14d   : > { %843 = vst.msk [vmem:[#allocation2 + $0x70] sm:$0xff] %vm828_vm8, %v809_v28 }
 0x14f   : > { %v1509_v62 = vpop.permute.xlu0 %1508 }
 0x150   : > { %1553 = vst.msk [vmem:[#allocation2 + $0x20] sm:$0xff] %vm1548_vm15, %v1509_v62  ;;  %v1527_v56 = vpop.permute.xlu1 %1526  ;;  %v1577_v30 = vld [vmem:[#allocation2 + $0x60] sm:$0xff] }
 0x151   : > { %1562 = vst.msk [vmem:[#allocation2 + $0x68] sm:$0xff] %vm1548_vm15, %v1527_v56  ;;  %2055 = vmatprep.mubr.msk.bf16.mxu1 %vm1602_vm0, %v1577_v30 }
 0x153   : > { %v793_v21 = vpop.permute.xlu0 %792 }
 0x154   : > { %835 = vst.msk [vmem:[#allocation2 + $0x30] sm:$0xff] %vm828_vm8, %v793_v21  ;;  %v811_v10 = vpop.permute.xlu1 %810 }
 0x155   : > { %844 = vst.msk [vmem:[#allocation2 + $0x78] sm:$0xff] %vm828_vm8, %v811_v10 }
 0x157   : > { %v1511_v29 = vpop.permute.xlu0 %1510  ;;  %v1569_v6 = vld [vmem:[#allocation2 + $0x20] sm:$0xff] }
 0x158   : > { %1554 = vst.msk [vmem:[#allocation2 + $0x28] sm:$0xff] %vm1548_vm15, %v1511_v29  ;;  %2039 = vmatprep.mubr.msk.bf16.mxu0 %vm1602_vm0, %v1569_v6  ;;  %v1053_v24 = vpop.permute.xlu1 %1052  ;;  %v1578_v4 = vld [vmem:[#allocation2 + $0x68] sm:$0xff] }
 0x159   : > { %1087 = vst.msk [vmem:[#allocation2 + $0x70] sm:$0xff] %vm1072_vm9, %v1053_v24  ;;  %2056 = vmatmul.mubr.msk.bf16.gmra.mrb[8].mxu1 %vm1602_vm0, %v1578_v4 }
 0x15b   : > { %v795_v0 = vpop.permute.xlu0 %794 }
 0x15c   : > { %836 = vst.msk [vmem:[#allocation2 + $0x38] sm:$0xff] %vm828_vm8, %v795_v0  ;;  %v1055_v1 = vpop.permute.xlu1 %1054 }
 0x15d   : > { %1088 = vst.msk [vmem:[#allocation2 + $0x78] sm:$0xff] %vm1072_vm9, %v1055_v1 }
 0x15f   : > { %v1037_v36 = vpop.permute.xlu0 %1036  ;;  %v1570_v25 = vld [vmem:[#allocation2 + $0x28] sm:$0xff] }
 0x160   : > { %1079 = vst.msk [vmem:[#allocation2 + $0x30] sm:$0xff] %vm1072_vm9, %v1037_v36  ;;  %2040 = vmatmul.mubr.msk.bf16.gmra.mrb[8].mxu0 %vm1602_vm0, %v1570_v25  ;;  %v1123_v8 = vpop.permute.xlu1 %1122 }
 0x161   : > { %1157 = vst.msk [vmem:[#allocation2 + $0x70] sm:$0xff] %vm1142_vm10, %v1123_v8 }
 0x163   : > { %v1039_v38 = vpop.permute.xlu0 %1038 }
 0x164   : > { %1080 = vst.msk [vmem:[#allocation2 + $0x38] sm:$0xff] %vm1072_vm9, %v1039_v38  ;;  %v1125_v54 = vpop.permute.xlu1 %1124 }
 0x165   : > { %1158 = vst.msk [vmem:[#allocation2 + $0x78] sm:$0xff] %vm1142_vm10, %v1125_v54 }
 0x167   : > { %v1107_v22 = vpop.permute.xlu0 %1106 }
 0x168   : > { %1149 = vst.msk [vmem:[#allocation2 + $0x30] sm:$0xff] %vm1142_vm10, %v1107_v22  ;;  %v1215_v46 = vpop.permute.xlu1 %1214 }
 0x169   : > { %1249 = vst.msk [vmem:[#allocation2 + $0x70] sm:$0xff] %vm1234_vm11, %v1215_v46 }
 0x16b   : > { %v1109_v60 = vpop.permute.xlu0 %1108 }
 0x16c   : > { %1150 = vst.msk [vmem:[#allocation2 + $0x38] sm:$0xff] %vm1142_vm10, %v1109_v60  ;;  %v1217_v50 = vpop.permute.xlu1 %1216 }
 0x16d   : > { %1250 = vst.msk [vmem:[#allocation2 + $0x78] sm:$0xff] %vm1234_vm11, %v1217_v50 }
 0x16f   : > { %v1199_v13 = vpop.permute.xlu0 %1198 }
 0x170   : > { %1241 = vst.msk [vmem:[#allocation2 + $0x30] sm:$0xff] %vm1234_vm11, %v1199_v13  ;;  %v1291_v45 = vpop.permute.xlu1 %1290 }
 0x171   : > { %1325 = vst.msk [vmem:[#allocation2 + $0x70] sm:$0xff] %vm1310_vm12, %v1291_v45 }
 0x173   : > { %v1201_v51 = vpop.permute.xlu0 %1200 }
 0x174   : > { %1242 = vst.msk [vmem:[#allocation2 + $0x38] sm:$0xff] %vm1234_vm11, %v1201_v51  ;;  %v1293_v11 = vpop.permute.xlu1 %1292 }
 0x175   : > { %1326 = vst.msk [vmem:[#allocation2 + $0x78] sm:$0xff] %vm1310_vm12, %v1293_v11 }
 0x177   : > { %v1275_v15 = vpop.permute.xlu0 %1274 }
 0x178   : > { %1317 = vst.msk [vmem:[#allocation2 + $0x30] sm:$0xff] %vm1310_vm12, %v1275_v15  ;;  %v1361_v58 = vpop.permute.xlu1 %1360 }
 0x179   : > { %1395 = vst.msk [vmem:[#allocation2 + $0x70] sm:$0xff] %vm1380_vm13, %v1361_v58 }
 0x17b   : > { %v1277_v34 = vpop.permute.xlu0 %1276 }
 0x17c   : > { %1318 = vst.msk [vmem:[#allocation2 + $0x38] sm:$0xff] %vm1310_vm12, %v1277_v34  ;;  %v1363_v23 = vpop.permute.xlu1 %1362 }
 0x17d   : > { %1396 = vst.msk [vmem:[#allocation2 + $0x78] sm:$0xff] %vm1380_vm13, %v1363_v23 }
 0x17f   : > { %v1345_v7 = vpop.permute.xlu0 %1344 }
 0x180   : > { %1387 = vst.msk [vmem:[#allocation2 + $0x30] sm:$0xff] %vm1380_vm13, %v1345_v7  ;;  %v1453_v35 = vpop.permute.xlu1 %1452 }
 0x181   : > { %1487 = vst.msk [vmem:[#allocation2 + $0x70] sm:$0xff] %vm1472_vm14, %v1453_v35 }
 0x183   : > { %v1347_v37 = vpop.permute.xlu0 %1346 }
 0x184   : > { %1388 = vst.msk [vmem:[#allocation2 + $0x38] sm:$0xff] %vm1380_vm13, %v1347_v37  ;;  %v1455_v57 = vpop.permute.xlu1 %1454 }
 0x185   : > { %1488 = vst.msk [vmem:[#allocation2 + $0x78] sm:$0xff] %vm1472_vm14, %v1455_v57 }
 0x187   : > { %v1437_v40 = vpop.permute.xlu0 %1436 }
 0x188   : > { %1479 = vst.msk [vmem:[#allocation2 + $0x30] sm:$0xff] %vm1472_vm14, %v1437_v40  ;;  %v1529_v3 = vpop.permute.xlu1 %1528 }
 0x189   : > { %1563 = vst.msk [vmem:[#allocation2 + $0x70] sm:$0xff] %vm1548_vm15, %v1529_v3 }
 0x18b   : > { %v1439_v16 = vpop.permute.xlu0 %1438 }
 0x18c   : > { %1480 = vst.msk [vmem:[#allocation2 + $0x38] sm:$0xff] %vm1472_vm14, %v1439_v16  ;;  %v1531_v27 = vpop.permute.xlu1 %1530 }
 0x18d   : > { %1564 = vst.msk [vmem:[#allocation2 + $0x78] sm:$0xff] %vm1548_vm15, %v1531_v27 }
 0x18f   : > { %v1513_v63 = vpop.permute.xlu0 %1512 }
 0x190   : > { %1555 = vst.msk [vmem:[#allocation2 + $0x30] sm:$0xff] %vm1548_vm15, %v1513_v63  ;;  %v1579_v33 = vld [vmem:[#allocation2 + $0x70] sm:$0xff] }
 0x191   : > { %2059 = vmatprep.mubr.msk.bf16.mxu1 %vm1602_vm0, %v1579_v33 }
 0x193   : > { %v1515_v44 = vpop.permute.xlu0 %1514 }
 0x194   : > { %1556 = vst.msk [vmem:[#allocation2 + $0x38] sm:$0xff] %vm1548_vm15, %v1515_v44  ;;  %v1580_v5 = vld [vmem:[#allocation2 + $0x78] sm:$0xff] }
 0x195   : > { %2060 = vmatmul.mubr.msk.bf16.gmra.mrb[12].mxu1 %vm1602_vm0, %v1580_v5 }
 0x197   : > { %v1571_v20 = vld [vmem:[#allocation2 + $0x30] sm:$0xff] }
 0x198   : > { %2043 = vmatprep.mubr.msk.bf16.mxu0 %vm1602_vm0, %v1571_v20 }
 0x19b   : > { %v1572_v52 = vld [vmem:[#allocation2 + $0x38] sm:$0xff] }
 0x19c   : > { %2044 = vmatmul.mubr.msk.bf16.gmra.mrb[12].mxu0 %vm1602_vm0, %v1572_v52 }
 0x1ac   : > { %v2049_v53 = vpop.f32.mrb[0].mxu1 }
 0x1ad   : > { %v1762_v2 = vadd.f32 %v2049_v53, %v3184_v43  ;;  %v1753_v32 = vpop.f32.mrb[1].mxu1 }
 0x1ae   : > { %v1754_v18 = vadd.f32 %v3184_v43, %v1753_v32  ;;  %v2050_v19 = vpop.f32.mrb[2].mxu1 }
 0x1af   : > { %1834 = vst [vmem:[%s3189_s10 + $0x90] sm:$0xff] %v1762_v2  ;;  %v1765_v42 = vadd.f32 %v2050_v19, %v3184_v43  ;;  %v1756_v47 = vpop.f32.mrb[3].mxu1 }
 0x1b0   : > { %1832 = vst [vmem:[%s3189_s10 + $0x80] sm:$0xff] %v1754_v18  ;;  %v1757_v59 = vadd.f32 %v3184_v43, %v1756_v47 }
 0x1b1   : > { %1835 = vst [vmem:[%s3189_s10 + $0x98] sm:$0xff] %v1765_v42 }
 0x1b2   : > { %1833 = vst [vmem:[%s3189_s10 + $0x88] sm:$0xff] %v1757_v59 }
 0x1b3   : > { %v2033_v55 = vpop.f32.mrb[0].mxu0 }
 0x1b4   : > { %v1698_v12 = vadd.f32 %v2033_v55, %v3184_v43  ;;  %v1689_v31 = vpop.f32.mrb[1].mxu0 }
 0x1b5   : > { %v1690_v9 = vadd.f32 %v3184_v43, %v1689_v31  ;;  %v2034_v61 = vpop.f32.mrb[2].mxu0 }
 0x1b6   : > { %1818 = vst [vmem:[%s3189_s10 + $0x10] sm:$0xff] %v1698_v12  ;;  %v1701_v49 = vadd.f32 %v2034_v61, %v3184_v43  ;;  %v1692_v14 = vpop.f32.mrb[3].mxu0 }
 0x1b7   : > { %1816 = vst [vmem:[%s3189_s10] sm:$0xff] %v1690_v9  ;;  %v1693_v17 = vadd.f32 %v3184_v43, %v1692_v14 }
 0x1b8   : > { %1819 = vst [vmem:[%s3189_s10 + $0x18] sm:$0xff] %v1701_v49 }
 0x1b9   : > { %1817 = vst [vmem:[%s3189_s10 + $0x8] sm:$0xff] %v1693_v17 }
 0x1ec   : > { %v2053_v48 = vpop.f32.mrb[4].mxu1 }
 0x1ed   : > { %v1778_v41 = vadd.f32 %v2053_v48, %v3184_v43  ;;  %v1769_v26 = vpop.f32.mrb[5].mxu1 }
 0x1ee   : > { %v1770_v39 = vadd.f32 %v3184_v43, %v1769_v26  ;;  %v2054_v28 = vpop.f32.mrb[6].mxu1 }
 0x1ef   : > { %1838 = vst [vmem:[%s3189_s10 + $0xb0] sm:$0xff] %v1778_v41  ;;  %v1781_v62 = vadd.f32 %v2054_v28, %v3184_v43  ;;  %v1772_v56 = vpop.f32.mrb[7].mxu1 }
 0x1f0   : > { %1836 = vst [vmem:[%s3189_s10 + $0xa0] sm:$0xff] %v1770_v39  ;;  %v1773_v30 = vadd.f32 %v3184_v43, %v1772_v56 }
 0x1f1   : > { %1839 = vst [vmem:[%s3189_s10 + $0xb8] sm:$0xff] %v1781_v62 }
 0x1f2   : > { %1837 = vst [vmem:[%s3189_s10 + $0xa8] sm:$0xff] %v1773_v30 }
 0x1f3   : > { %v2037_v21 = vpop.f32.mrb[4].mxu0 }
 0x1f4   : > { %v1714_v10 = vadd.f32 %v2037_v21, %v3184_v43  ;;  %v1705_v29 = vpop.f32.mrb[5].mxu0 }
 0x1f5   : > { %v1706_v6 = vadd.f32 %v3184_v43, %v1705_v29  ;;  %v2038_v24 = vpop.f32.mrb[6].mxu0 }
 0x1f6   : > { %1822 = vst [vmem:[%s3189_s10 + $0x30] sm:$0xff] %v1714_v10  ;;  %v1717_v4 = vadd.f32 %v2038_v24, %v3184_v43  ;;  %v1708_v0 = vpop.f32.mrb[7].mxu0 }
 0x1f7   : > { %1820 = vst [vmem:[%s3189_s10 + $0x20] sm:$0xff] %v1706_v6  ;;  %v1709_v1 = vadd.f32 %v3184_v43, %v1708_v0 }
 0x1f8   : > { %1823 = vst [vmem:[%s3189_s10 + $0x38] sm:$0xff] %v1717_v4 }
 0x1f9   : > { %1821 = vst [vmem:[%s3189_s10 + $0x28] sm:$0xff] %v1709_v1 }
 0x22c   : > { %v2057_v36 = vpop.f32.mrb[8].mxu1 }
 0x22d   : > { %v1794_v25 = vadd.f32 %v2057_v36, %v3184_v43  ;;  %v1785_v8 = vpop.f32.mrb[9].mxu1 }
 0x22e   : > { %v1786_v38 = vadd.f32 %v3184_v43, %v1785_v8  ;;  %v2058_v54 = vpop.f32.mrb[10].mxu1 }
 0x22f   : > { %1842 = vst [vmem:[%s3189_s10 + $0xd0] sm:$0xff] %v1794_v25  ;;  %v1797_v22 = vadd.f32 %v2058_v54, %v3184_v43  ;;  %v1788_v46 = vpop.f32.mrb[11].mxu1 }
 0x230   : > { %1840 = vst [vmem:[%s3189_s10 + $0xc0] sm:$0xff] %v1786_v38  ;;  %v1789_v60 = vadd.f32 %v3184_v43, %v1788_v46 }
 0x231   : > { %1843 = vst [vmem:[%s3189_s10 + $0xd8] sm:$0xff] %v1797_v22 }
 0x232   : > { %1841 = vst [vmem:[%s3189_s10 + $0xc8] sm:$0xff] %v1789_v60 }
 0x233   : > { %v2041_v50 = vpop.f32.mrb[8].mxu0 }
 0x234   : > { %v1730_v13 = vadd.f32 %v2041_v50, %v3184_v43  ;;  %v1721_v45 = vpop.f32.mrb[9].mxu0 }
 0x235   : > { %v1722_v51 = vadd.f32 %v3184_v43, %v1721_v45  ;;  %v2042_v11 = vpop.f32.mrb[10].mxu0 }
 0x236   : > { %1826 = vst [vmem:[%s3189_s10 + $0x50] sm:$0xff] %v1730_v13  ;;  %v1733_v15 = vadd.f32 %v2042_v11, %v3184_v43  ;;  %v1724_v58 = vpop.f32.mrb[11].mxu0 }
 0x237   : > { %1824 = vst [vmem:[%s3189_s10 + $0x40] sm:$0xff] %v1722_v51  ;;  %v1725_v34 = vadd.f32 %v3184_v43, %v1724_v58 }
 0x238   : > { %1827 = vst [vmem:[%s3189_s10 + $0x58] sm:$0xff] %v1733_v15 }
 0x239   : > { %1825 = vst [vmem:[%s3189_s10 + $0x48] sm:$0xff] %v1725_v34 }
 0x268   : > { %v2061_v23 = vpop.f32.mrb[12].mxu1 }
 0x269   : > { %v1810_v7 = vadd.f32 %v2061_v23, %v3184_v43  ;;  %v1801_v35 = vpop.f32.mrb[13].mxu1 }
 0x26a   : > { %v1802_v37 = vadd.f32 %v3184_v43, %v1801_v35  ;;  %v2062_v57 = vpop.f32.mrb[14].mxu1 }
 0x26b   : > { %1846 = vst [vmem:[%s3189_s10 + $0xf0] sm:$0xff] %v1810_v7  ;;  %v1813_v40 = vadd.f32 %v2062_v57, %v3184_v43  ;;  %v1804_v3 = vpop.f32.mrb[15].mxu1 }
 0x26c   : > { %1844 = vst [vmem:[%s3189_s10 + $0xe0] sm:$0xff] %v1802_v37  ;;  %v1805_v16 = vadd.f32 %v3184_v43, %v1804_v3 }
 0x26d   : > { %1847 = vst [vmem:[%s3189_s10 + $0xf8] sm:$0xff] %v1813_v40 }
 0x26e   : > { %1845 = vst [vmem:[%s3189_s10 + $0xe8] sm:$0xff] %v1805_v16 }
 0x26f   : > { %v2045_v27 = vpop.f32.mrb[12].mxu0 }
 0x270   : > { %v1746_v63 = vadd.f32 %v2045_v27, %v3184_v43  ;;  %v1737_v33 = vpop.f32.mrb[13].mxu0 }
 0x271   : > { %v1738_v44 = vadd.f32 %v3184_v43, %v1737_v33  ;;  %v2046_v5 = vpop.f32.mrb[14].mxu0 }
 0x272   : > { %1830 = vst [vmem:[%s3189_s10 + $0x70] sm:$0xff] %v1746_v63  ;;  %v1749_v20 = vadd.f32 %v2046_v5, %v3184_v43  ;;  %v1740_v52 = vpop.f32.mrb[15].mxu0 }
 0x273   : > { %1828 = vst [vmem:[%s3189_s10 + $0x60] sm:$0xff] %v1738_v44  ;;  %v1741_v53 = vadd.f32 %v3184_v43, %v1740_v52 }
 0x274   : > { %1831 = vst [vmem:[%s3189_s10 + $0x78] sm:$0xff] %v1749_v20 }
 0x275   : > { %1829 = vst [vmem:[%s3189_s10 + $0x68] sm:$0xff] %v1741_v53 }
 0x276 PF: > { %s13_s12 = sadd.s32 1, %s2113_s12  }
 0x277   : > { %p10_p4 = scmp.ge.s32.totalorder %s13_s12, 4  }
 0x279   :  { %12 = sbr.rel (!%p10_p4) target bundleno = 1 (0x1), region = 62 }

</bundles_post_ra>
